<compile_context>
chip_gen: v6e
topology: v6e:2x2x1
jax: 0.10.0
libtpu: 0.0.40
codegen_flags: <defaults>
</compile_context>

<pallas_src>
import functools

import jax
import jax.numpy as jnp
import numpy as np
from jax import lax
from jax.experimental import pallas as pl
from jax.experimental.pallas import tpu as pltpu


def _round_up(x, m):
    return ((x + m - 1) // m) * m


# ----------------------------------------------------------------------------
# Fused Pallas kernel: stacked LSTM (wavefront-skewed) + dense stack.
# ----------------------------------------------------------------------------
def _fused_forward_kernel(x_ref, w_ref, out_ref, hseq_ref, *, T, B, H,
                          lstm_slots, dense_slots):
    """x_ref:  (T*B, D_pad)  time-major flattened input (padded features).
       w_ref:  (rows, lanes) single packed weight buffer (one DMA).
       out_ref:(T*B, out_pad) lane-dense output (time-major rows).
       hseq_ref: VMEM scratch (T*B, H) for the last LSTM layer's outputs.
    """
    lanes = w_ref.shape[1]
    G = 4 * H  # gate width

    def carve(off, rows, cols):
        # Static slices of the packed buffer: zero-cost views + one load each.
        blk = w_ref[off:off + rows, :]
        return blk[:, :cols] if cols < lanes else blk

    # ---- carve per-layer weight views out of the single packed buffer ------
    lstm_w = [(carve(wo, wr, G), carve(ho, H, G), carve(bo, 1, G))
              for (wo, wr, ho, bo) in lstm_slots]
    n_lstm = len(lstm_w)

    # ---- layer-0 input projection hoisted out of the recurrence ------------
    x = x_ref[...]                                               # (T*B, D_pad)
    wih0, whh0, b0 = lstm_w[0]
    xproj0 = jnp.dot(x, wih0, preferred_element_type=jnp.float32) + b0
    xrows = [xproj0[t * B:(t + 1) * B, :] for t in range(T)]     # static slices

    h = [jnp.zeros((B, H), jnp.float32) for _ in range(n_lstm)]
    c = [jnp.zeros((B, H), jnp.float32) for _ in range(n_lstm)]

    def cell(gates, c_prev):
        # Full-width transcendentals (2 EUP pushes) then gate extraction.
        sig = jax.nn.sigmoid(gates)                              # (B, 4H)
        th = jnp.tanh(gates)                                     # (B, 4H)
        i_g = sig[:, 0 * H:1 * H]
        f_g = sig[:, 1 * H:2 * H]
        g_g = th[:, 2 * H:3 * H]
        o_g = sig[:, 3 * H:4 * H]
        c_new = f_g * c_prev + i_g * g_g
        return o_g * jnp.tanh(c_new), c_new

    # ---- wavefront-skewed recurrence: layer l runs time step t = s - l -----
    for s in range(T + n_lstm - 1):
        prev_h = list(h)            # snapshot: every layer reads last step's h
        for l in range(n_lstm):
            t = s - l
            if t < 0 or t >= T:
                continue
            wih_l, whh_l, b_l = lstm_w[l]
            if l == 0:
                gates = xrows[t] + jnp.dot(prev_h[0], whh_l,
                                           preferred_element_type=jnp.float32)
            else:
                # Input projection comes straight from the just-computed
                # h of the layer below (no post-hoc hoisted matmul needed).
                gates = (b_l
                         + jnp.dot(prev_h[l - 1], wih_l,
                                   preferred_element_type=jnp.float32)
                         + jnp.dot(prev_h[l], whh_l,
                                   preferred_element_type=jnp.float32))
            h[l], c[l] = cell(gates, c[l])
            if l == n_lstm - 1:
                hseq_ref[t * B:(t + 1) * B, :] = h[l]

    # ---- dense stack on the time-major (T*B, H) activations ----------------
    y = hseq_ref[...]
    n_dense = len(dense_slots)
    for d, (wo, in_rows, out_cols, bo) in enumerate(dense_slots):
        w_d = carve(wo, in_rows, out_cols)
        b_d = carve(bo, 1, out_cols)
        y = jnp.dot(y, w_d, preferred_element_type=jnp.float32) + b_d
        if d < n_dense - 1:
            y = jnp.maximum(y, 0.0)

    out_ref[...] = y.astype(out_ref.dtype)                       # lane-dense store


# ----------------------------------------------------------------------------
# Host-side weight packing (single contiguous buffer) and the jitted wrapper.
# ----------------------------------------------------------------------------
def pack_params(params, audio_dim):
    """Pack every weight/bias into ONE (rows, lanes) f32 buffer (one DMA).

    Returns (packed, layout) where layout is a hashable nested tuple of ints:
        (H, D_pad, lanes, total_rows, out_pad, lstm_slots, dense_slots)
    """
    lstm = params["lstm"]
    dense = params["dense"]
    H = int(lstm[0][1].shape[1])            # w_hh: (4H, H)
    D = int(lstm[0][0].shape[1])            # w_ih layer0: (4H, D)
    D_pad = _round_up(D, 8)
    out_pad = _round_up(audio_dim, 128)
    cols_needed = [4 * H, out_pad] + [int(w.shape[0]) for (w, _b, _r) in dense]
    lanes = _round_up(max(cols_needed), 128)

    blocks = []
    offset = 0

    def add(mat):
        nonlocal offset
        mat = np.asarray(mat, np.float32)
        rows, cols = mat.shape
        rows_pad = _round_up(rows, 8)       # keep every block sublane-aligned
        blk = np.zeros((rows_pad, lanes), np.float32)
        blk[:rows, :cols] = mat
        off = offset
        blocks.append(blk)
        offset += rows_pad
        return off

    lstm_slots = []
    for li, (w_ih, w_hh, b_ih, b_hh) in enumerate(lstm):
        in_dim = int(w_ih.shape[1])
        carve_rows = D_pad if li == 0 else in_dim   # layer-0 x is lane-padded
        wih_off = add(np.asarray(w_ih).T)           # (In, 4H)
        whh_off = add(np.asarray(w_hh).T)           # (H, 4H)
        b_off = add(np.asarray(b_ih + b_hh).reshape(1, -1))
        lstm_slots.append((wih_off, carve_rows, whh_off, b_off))

    dense_slots = []
    n_dense = len(dense)
    for di, (w, b, _relu) in enumerate(dense):
        w_t = np.asarray(w).T                       # (in, out)
        bias = np.asarray(b).reshape(1, -1)
        out_cols = int(w_t.shape[1])
        if di == n_dense - 1:
            # Zero-pad the final Linear so the single HBM writeback is a
            # lane-dense (T*B, 128) store; wrapper slices back to audio_dim.
            w_t = np.pad(w_t, ((0, 0), (0, out_pad - out_cols)))
            bias = np.pad(bias, ((0, 0), (0, out_pad - out_cols)))
            out_cols = out_pad
        w_off = add(w_t)
        b_off = add(bias)
        dense_slots.append((w_off, int(w_t.shape[0]), out_cols, b_off))

    packed = jnp.asarray(np.concatenate(blocks, axis=0))
    total_rows = int(packed.shape[0])
    layout = (H, D_pad, int(lanes), total_rows, int(out_pad),
              tuple(tuple(int(v) for v in s) for s in lstm_slots),
              tuple(tuple(int(v) for v in s) for s in dense_slots))
    return packed, layout


@functools.partial(jax.jit,
                   static_argnames=("layout", "sequence_length", "audio_dim"))
def mocap2audio_forward(packed_w, x, *, layout, sequence_length, audio_dim):
    """x: (B, T, mocap_dim) -> (B*T/sequence_length, sequence_length, audio_dim)."""
    B, T, D = x.shape
    assert (B * T) % sequence_length == 0
    H, D_pad, lanes, total_rows, out_pad, lstm_slots, dense_slots = layout
    n_lstm = len(lstm_slots)

    # Time-major flatten + feature lane-pad done in the wrapper (free in XLA).
    x_tm = jnp.transpose(x, (1, 0, 2)).reshape(T * B, D).astype(jnp.float32)
    if D_pad > D:
        x_tm = jnp.pad(x_tm, ((0, 0), (0, D_pad - D)))

    # Advisory cost estimate: helps XLA overlap the custom call with the
    # surrounding reshape/slice ops.
    flops = 2 * T * B * D_pad * 4 * H                  # hoisted layer-0 xproj
    flops += T * 2 * B * H * 4 * H                     # layer-0 recurrence
    flops += (n_lstm - 1) * T * 2 * 2 * B * H * 4 * H  # layers >= 1 (2 dots/step)
    for (_wo, in_rows, out_cols, _bo) in dense_slots:
        flops += 2 * T * B * in_rows * out_cols
    transcendentals = n_lstm * T * B * 9 * H
    bytes_accessed = 4 * (T * B * D_pad + total_rows * lanes + T * B * out_pad)

    kernel = functools.partial(_fused_forward_kernel, T=T, B=B, H=H,
                               lstm_slots=lstm_slots, dense_slots=dense_slots)
    y = pl.pallas_call(
        kernel,
        out_shape=jax.ShapeDtypeStruct((T * B, out_pad), jnp.float32),
        in_specs=[pl.BlockSpec((T * B, D_pad), lambda: (0, 0)),
                  pl.BlockSpec((total_rows, lanes), lambda: (0, 0))],
        out_specs=pl.BlockSpec((T * B, out_pad), lambda: (0, 0)),
        scratch_shapes=[pltpu.VMEM((T * B, H), jnp.float32)],
        cost_estimate=pl.CostEstimate(flops=flops,
                                      transcendentals=transcendentals,
                                      bytes_accessed=bytes_accessed),
    )(x_tm, packed_w)

    # Kernel rows are time-major (t, b); dense layers are row-wise so the
    # batch-major permutation after the kernel is exact (matches torch).
    y = jnp.transpose(y[:, :audio_dim].reshape(T, B, audio_dim), (1, 0, 2))
    return y.reshape(-1, sequence_length, audio_dim)


# ----------------------------------------------------------------------------
# Parameter init (torch-style) and pure-JAX reference for the sanity check.
# ----------------------------------------------------------------------------
def init_params(key, sequence_length, mocap_dim, audio_dim,
                rnn_layer_count, rnn_layer_size, dense_layer_sizes):
    params = {}
    H = rnn_layer_size
    bound = 1.0 / np.sqrt(H)
    lstm = []
    for layer in range(rnn_layer_count):
        in_dim = mocap_dim if layer == 0 else H
        key, k1, k2, k3, k4 = jax.random.split(key, 5)
        w_ih = jax.random.uniform(k1, (4 * H, in_dim), jnp.float32, -bound, bound)
        w_hh = jax.random.uniform(k2, (4 * H, H), jnp.float32, -bound, bound)
        b_ih = jax.random.uniform(k3, (4 * H,), jnp.float32, -bound, bound)
        b_hh = jax.random.uniform(k4, (4 * H,), jnp.float32, -bound, bound)
        lstm.append((w_ih, w_hh, b_ih, b_hh))
    params["lstm"] = lstm

    dense = []
    dims = [rnn_layer_size] + list(dense_layer_sizes) + [audio_dim]
    for li in range(len(dims) - 1):
        fan_in, fan_out = dims[li], dims[li + 1]
        b = 1.0 / np.sqrt(fan_in)
        key, k1, k2 = jax.random.split(key, 3)
        w = jax.random.uniform(k1, (fan_out, fan_in), jnp.float32, -b, b)
        bias = jax.random.uniform(k2, (fan_out,), jnp.float32, -b, b)
        relu = li < len(dims) - 2   # ReLU after every dense except the last
        dense.append((w, bias, relu))
    params["dense"] = dense
    return params


def reference_forward(params, x, sequence_length, audio_dim):
    h_seq = jnp.transpose(x, (1, 0, 2)).astype(jnp.float32)   # (T, B, D)
    for (w_ih, w_hh, b_ih, b_hh) in params["lstm"]:
        H = w_hh.shape[1]
        B = h_seq.shape[1]

        def step(carry, xt):
            h_prev, c_prev = carry
            gates = xt @ w_ih.T + b_ih + h_prev @ w_hh.T + b_hh
            i = jax.nn.sigmoid(gates[:, 0 * H:1 * H])
            f = jax.nn.sigmoid(gates[:, 1 * H:2 * H])
            g = jnp.tanh(gates[:, 2 * H:3 * H])
            o = jax.nn.sigmoid(gates[:, 3 * H:4 * H])
            c = f * c_prev + i * g
            hh = o * jnp.tanh(c)
            return (hh, c), hh

        init = (jnp.zeros((B, H), jnp.float32), jnp.zeros((B, H), jnp.float32))
        _, h_seq = lax.scan(step, init, h_seq)
    h = jnp.transpose(h_seq, (1, 0, 2))
    y = h.reshape(-1, h.shape[2])
    for (w, bias, relu) in params["dense"]:
        y = y @ w.T + bias
        if relu:
            y = jnp.maximum(y, 0.0)
    return y.reshape(-1, sequence_length, audio_dim)


# ----------------------------------------------------------------------------
if __name__ == "__main__":
    # Small shapes consistent with the module:
    joint_count, joint_dim = 4, 3
    mocap_dim = joint_count * joint_dim        # 12
    sequence_length = 8
    audio_dim = 16
    rnn_layer_count = 2
    rnn_layer_size = 32
    dense_layer_sizes = [32, 16]
    batch = 2

    key = jax.random.PRNGKey(0)
    key, kx = jax.random.split(key)
    x = jax.random.normal(kx, (batch, sequence_length, mocap_dim), jnp.float32)

    params = init_params(key, sequence_length, mocap_dim, audio_dim,
                         rnn_layer_count, rnn_layer_size, dense_layer_sizes)
    packed_w, layout = pack_params(params, audio_dim)

    out = mocap2audio_forward(packed_w, x, layout=layout,
                              sequence_length=sequence_length,
                              audio_dim=audio_dim)
    out = jax.block_until_ready(out)

    ref = jax.block_until_ready(
        reference_forward(params, x, sequence_length, audio_dim))

    assert out.shape == (batch, sequence_length, audio_dim), out.shape
    np.testing.assert_allclose(np.asarray(out), np.asarray(ref),
                               rtol=1e-4, atol=1e-4)
    print("KERNEL_OK")
</pallas_src>

<mosaic_0001>
module attributes {stable_mosaic.version = 11 : i64} {
  func.func @_fused_forward_kernel(%arg0: memref<16x16xf32, #tpu.memory_space<vmem>>, %arg1: memref<232x128xf32, #tpu.memory_space<vmem>>, %arg2: memref<16x128xf32, #tpu.memory_space<vmem>>, %arg3: memref<16x32xf32, #tpu.memory_space<vmem>>) attributes {dimension_semantics = [], scalar_prefetch = 0 : i64, scratch_operands = 1 : i64, tpu.core_type = #tpu.core_type<tc>} {
    %c0 = arith.constant 0 : index
    %c0_0 = arith.constant 0 : index
    %0 = vector.load %arg1[%c0, %c0_0] : memref<232x128xf32, #tpu.memory_space<vmem>>, vector<16x128xf32>
    %c16 = arith.constant 16 : index
    %c0_1 = arith.constant 0 : index
    %1 = vector.load %arg1[%c16, %c0_1] : memref<232x128xf32, #tpu.memory_space<vmem>>, vector<32x128xf32>
    %c48 = arith.constant 48 : index
    %c0_2 = arith.constant 0 : index
    %2 = vector.load %arg1[%c48, %c0_2] : memref<232x128xf32, #tpu.memory_space<vmem>>, vector<1x128xf32>
    %c56 = arith.constant 56 : index
    %c0_3 = arith.constant 0 : index
    %3 = vector.load %arg1[%c56, %c0_3] : memref<232x128xf32, #tpu.memory_space<vmem>>, vector<32x128xf32>
    %c88 = arith.constant 88 : index
    %c0_4 = arith.constant 0 : index
    %4 = vector.load %arg1[%c88, %c0_4] : memref<232x128xf32, #tpu.memory_space<vmem>>, vector<32x128xf32>
    %c120 = arith.constant 120 : index
    %c0_5 = arith.constant 0 : index
    %5 = vector.load %arg1[%c120, %c0_5] : memref<232x128xf32, #tpu.memory_space<vmem>>, vector<1x128xf32>
    %c0_6 = arith.constant 0 : index
    %c0_7 = arith.constant 0 : index
    %6 = vector.load %arg0[%c0_6, %c0_7] : memref<16x16xf32, #tpu.memory_space<vmem>>, vector<16x16xf32>
    %cst = arith.constant dense<0.000000e+00> : vector<16x128xf32>
    %7 = tpu.matmul %6, %0, %cst {dimension_numbers = #tpu.dot_dimension_numbers<[1], [0], [0], [1], [0, 0, 1, 1], [], []>} : vector<16x16xf32>, vector<16x128xf32>, vector<16x128xf32> -> vector<16x128xf32>
    %8 = vector.broadcast %2 : vector<1x128xf32> to vector<16x128xf32>
    %9 = arith.addf %7, %8 : vector<16x128xf32>
    %10 = vector.extract_strided_slice %9 {offsets = [0, 0], sizes = [2, 128], strides = [1, 1]} : vector<16x128xf32> to vector<2x128xf32>
    %11 = vector.extract_strided_slice %9 {offsets = [2, 0], sizes = [2, 128], strides = [1, 1]} : vector<16x128xf32> to vector<2x128xf32>
    %12 = vector.extract_strided_slice %9 {offsets = [4, 0], sizes = [2, 128], strides = [1, 1]} : vector<16x128xf32> to vector<2x128xf32>
    %13 = vector.extract_strided_slice %9 {offsets = [6, 0], sizes = [2, 128], strides = [1, 1]} : vector<16x128xf32> to vector<2x128xf32>
    %14 = vector.extract_strided_slice %9 {offsets = [8, 0], sizes = [2, 128], strides = [1, 1]} : vector<16x128xf32> to vector<2x128xf32>
    %15 = vector.extract_strided_slice %9 {offsets = [10, 0], sizes = [2, 128], strides = [1, 1]} : vector<16x128xf32> to vector<2x128xf32>
    %16 = vector.extract_strided_slice %9 {offsets = [12, 0], sizes = [2, 128], strides = [1, 1]} : vector<16x128xf32> to vector<2x128xf32>
    %17 = vector.extract_strided_slice %9 {offsets = [14, 0], sizes = [2, 128], strides = [1, 1]} : vector<16x128xf32> to vector<2x128xf32>
    %cst_8 = arith.constant 0.000000e+00 : f32
    %18 = vector.broadcast %cst_8 : f32 to vector<2x32xf32>
    %cst_9 = arith.constant 0.000000e+00 : f32
    %19 = vector.broadcast %cst_9 : f32 to vector<2x32xf32>
    %cst_10 = arith.constant 0.000000e+00 : f32
    %20 = vector.broadcast %cst_10 : f32 to vector<2x32xf32>
    %cst_11 = arith.constant 0.000000e+00 : f32
    %21 = vector.broadcast %cst_11 : f32 to vector<2x32xf32>
    %cst_12 = arith.constant dense<0.000000e+00> : vector<2x128xf32>
    %22 = tpu.matmul %18, %1, %cst_12 {dimension_numbers = #tpu.dot_dimension_numbers<[1], [0], [0], [1], [0, 0, 1, 1], [], []>} : vector<2x32xf32>, vector<32x128xf32>, vector<2x128xf32> -> vector<2x128xf32>
    %23 = arith.addf %10, %22 : vector<2x128xf32>
    %24 = arith.negf %23 : vector<2x128xf32>
    %25 = math.exp %24 : vector<2x128xf32>
    %cst_13 = arith.constant 1.000000e+00 : f32
    %26 = vector.broadcast %cst_13 : f32 to vector<2x128xf32>
    %27 = arith.addf %26, %25 : vector<2x128xf32>
    %28 = arith.divf %26, %27 : vector<2x128xf32>
    %29 = math.tanh %23 : vector<2x128xf32>
    %30 = vector.extract_strided_slice %28 {offsets = [0, 0], sizes = [2, 32], strides = [1, 1]} : vector<2x128xf32> to vector<2x32xf32>
    %31 = vector.extract_strided_slice %28 {offsets = [0, 32], sizes = [2, 32], strides = [1, 1]} : vector<2x128xf32> to vector<2x32xf32>
    %32 = vector.extract_strided_slice %29 {offsets = [0, 64], sizes = [2, 32], strides = [1, 1]} : vector<2x128xf32> to vector<2x32xf32>
    %33 = vector.extract_strided_slice %28 {offsets = [0, 96], sizes = [2, 32], strides = [1, 1]} : vector<2x128xf32> to vector<2x32xf32>
    %34 = arith.mulf %31, %20 : vector<2x32xf32>
    %35 = arith.mulf %30, %32 : vector<2x32xf32>
    %36 = arith.addf %34, %35 : vector<2x32xf32>
    %37 = math.tanh %36 : vector<2x32xf32>
    %38 = arith.mulf %33, %37 : vector<2x32xf32>
    %cst_14 = arith.constant dense<0.000000e+00> : vector<2x128xf32>
    %39 = tpu.matmul %38, %1, %cst_14 {dimension_numbers = #tpu.dot_dimension_numbers<[1], [0], [0], [1], [0, 0, 1, 1], [], []>} : vector<2x32xf32>, vector<32x128xf32>, vector<2x128xf32> -> vector<2x128xf32>
    %40 = arith.addf %11, %39 : vector<2x128xf32>
    %41 = arith.negf %40 : vector<2x128xf32>
    %42 = math.exp %41 : vector<2x128xf32>
    %cst_15 = arith.constant 1.000000e+00 : f32
    %43 = vector.broadcast %cst_15 : f32 to vector<2x128xf32>
    %44 = arith.addf %43, %42 : vector<2x128xf32>
    %45 = arith.divf %43, %44 : vector<2x128xf32>
    %46 = math.tanh %40 : vector<2x128xf32>
    %47 = vector.extract_strided_slice %45 {offsets = [0, 0], sizes = [2, 32], strides = [1, 1]} : vector<2x128xf32> to vector<2x32xf32>
    %48 = vector.extract_strided_slice %45 {offsets = [0, 32], sizes = [2, 32], strides = [1, 1]} : vector<2x128xf32> to vector<2x32xf32>
    %49 = vector.extract_strided_slice %46 {offsets = [0, 64], sizes = [2, 32], strides = [1, 1]} : vector<2x128xf32> to vector<2x32xf32>
    %50 = vector.extract_strided_slice %45 {offsets = [0, 96], sizes = [2, 32], strides = [1, 1]} : vector<2x128xf32> to vector<2x32xf32>
    %51 = arith.mulf %48, %36 : vector<2x32xf32>
    %52 = arith.mulf %47, %49 : vector<2x32xf32>
    %53 = arith.addf %51, %52 : vector<2x32xf32>
    %54 = math.tanh %53 : vector<2x32xf32>
    %55 = arith.mulf %50, %54 : vector<2x32xf32>
    %cst_16 = arith.constant dense<0.000000e+00> : vector<2x128xf32>
    %56 = tpu.matmul %38, %3, %cst_16 {dimension_numbers = #tpu.dot_dimension_numbers<[1], [0], [0], [1], [0, 0, 1, 1], [], []>} : vector<2x32xf32>, vector<32x128xf32>, vector<2x128xf32> -> vector<2x128xf32>
    %57 = vector.broadcast %5 : vector<1x128xf32> to vector<2x128xf32>
    %58 = arith.addf %57, %56 : vector<2x128xf32>
    %cst_17 = arith.constant dense<0.000000e+00> : vector<2x128xf32>
    %59 = tpu.matmul %19, %4, %cst_17 {dimension_numbers = #tpu.dot_dimension_numbers<[1], [0], [0], [1], [0, 0, 1, 1], [], []>} : vector<2x32xf32>, vector<32x128xf32>, vector<2x128xf32> -> vector<2x128xf32>
    %60 = arith.addf %58, %59 : vector<2x128xf32>
    %61 = arith.negf %60 : vector<2x128xf32>
    %62 = math.exp %61 : vector<2x128xf32>
    %cst_18 = arith.constant 1.000000e+00 : f32
    %63 = vector.broadcast %cst_18 : f32 to vector<2x128xf32>
    %64 = arith.addf %63, %62 : vector<2x128xf32>
    %65 = arith.divf %63, %64 : vector<2x128xf32>
    %66 = math.tanh %60 : vector<2x128xf32>
    %67 = vector.extract_strided_slice %65 {offsets = [0, 0], sizes = [2, 32], strides = [1, 1]} : vector<2x128xf32> to vector<2x32xf32>
    %68 = vector.extract_strided_slice %65 {offsets = [0, 32], sizes = [2, 32], strides = [1, 1]} : vector<2x128xf32> to vector<2x32xf32>
    %69 = vector.extract_strided_slice %66 {offsets = [0, 64], sizes = [2, 32], strides = [1, 1]} : vector<2x128xf32> to vector<2x32xf32>
    %70 = vector.extract_strided_slice %65 {offsets = [0, 96], sizes = [2, 32], strides = [1, 1]} : vector<2x128xf32> to vector<2x32xf32>
    %71 = arith.mulf %68, %21 : vector<2x32xf32>
    %72 = arith.mulf %67, %69 : vector<2x32xf32>
    %73 = arith.addf %71, %72 : vector<2x32xf32>
    %74 = math.tanh %73 : vector<2x32xf32>
    %75 = arith.mulf %70, %74 : vector<2x32xf32>
    %c0_19 = arith.constant 0 : index
    %c0_20 = arith.constant 0 : index
    %76 = vector.load %arg3[%c0_19, %c0_20] : memref<16x32xf32, #tpu.memory_space<vmem>>, vector<2x32xf32>
    tpu.vector_store %arg3[%c0_19, %c0_20], %75 {strides = array<i32>} : memref<16x32xf32, #tpu.memory_space<vmem>>, vector<2x32xf32>,
    %cst_21 = arith.constant dense<0.000000e+00> : vector<2x128xf32>
    %77 = tpu.matmul %55, %1, %cst_21 {dimension_numbers = #tpu.dot_dimension_numbers<[1], [0], [0], [1], [0, 0, 1, 1], [], []>} : vector<2x32xf32>, vector<32x128xf32>, vector<2x128xf32> -> vector<2x128xf32>
    %78 = arith.addf %12, %77 : vector<2x128xf32>
    %79 = arith.negf %78 : vector<2x128xf32>
    %80 = math.exp %79 : vector<2x128xf32>
    %cst_22 = arith.constant 1.000000e+00 : f32
    %81 = vector.broadcast %cst_22 : f32 to vector<2x128xf32>
    %82 = arith.addf %81, %80 : vector<2x128xf32>
    %83 = arith.divf %81, %82 : vector<2x128xf32>
    %84 = math.tanh %78 : vector<2x128xf32>
    %85 = vector.extract_strided_slice %83 {offsets = [0, 0], sizes = [2, 32], strides = [1, 1]} : vector<2x128xf32> to vector<2x32xf32>
    %86 = vector.extract_strided_slice %83 {offsets = [0, 32], sizes = [2, 32], strides = [1, 1]} : vector<2x128xf32> to vector<2x32xf32>
    %87 = vector.extract_strided_slice %84 {offsets = [0, 64], sizes = [2, 32], strides = [1, 1]} : vector<2x128xf32> to vector<2x32xf32>
    %88 = vector.extract_strided_slice %83 {offsets = [0, 96], sizes = [2, 32], strides = [1, 1]} : vector<2x128xf32> to vector<2x32xf32>
    %89 = arith.mulf %86, %53 : vector<2x32xf32>
    %90 = arith.mulf %85, %87 : vector<2x32xf32>
    %91 = arith.addf %89, %90 : vector<2x32xf32>
    %92 = math.tanh %91 : vector<2x32xf32>
    %93 = arith.mulf %88, %92 : vector<2x32xf32>
    %cst_23 = arith.constant dense<0.000000e+00> : vector<2x128xf32>
    %94 = tpu.matmul %55, %3, %cst_23 {dimension_numbers = #tpu.dot_dimension_numbers<[1], [0], [0], [1], [0, 0, 1, 1], [], []>} : vector<2x32xf32>, vector<32x128xf32>, vector<2x128xf32> -> vector<2x128xf32>
    %95 = vector.broadcast %5 : vector<1x128xf32> to vector<2x128xf32>
    %96 = arith.addf %95, %94 : vector<2x128xf32>
    %cst_24 = arith.constant dense<0.000000e+00> : vector<2x128xf32>
    %97 = tpu.matmul %75, %4, %cst_24 {dimension_numbers = #tpu.dot_dimension_numbers<[1], [0], [0], [1], [0, 0, 1, 1], [], []>} : vector<2x32xf32>, vector<32x128xf32>, vector<2x128xf32> -> vector<2x128xf32>
    %98 = arith.addf %96, %97 : vector<2x128xf32>
    %99 = arith.negf %98 : vector<2x128xf32>
    %100 = math.exp %99 : vector<2x128xf32>
    %cst_25 = arith.constant 1.000000e+00 : f32
    %101 = vector.broadcast %cst_25 : f32 to vector<2x128xf32>
    %102 = arith.addf %101, %100 : vector<2x128xf32>
    %103 = arith.divf %101, %102 : vector<2x128xf32>
    %104 = math.tanh %98 : vector<2x128xf32>
    %105 = vector.extract_strided_slice %103 {offsets = [0, 0], sizes = [2, 32], strides = [1, 1]} : vector<2x128xf32> to vector<2x32xf32>
    %106 = vector.extract_strided_slice %103 {offsets = [0, 32], sizes = [2, 32], strides = [1, 1]} : vector<2x128xf32> to vector<2x32xf32>
    %107 = vector.extract_strided_slice %104 {offsets = [0, 64], sizes = [2, 32], strides = [1, 1]} : vector<2x128xf32> to vector<2x32xf32>
    %108 = vector.extract_strided_slice %103 {offsets = [0, 96], sizes = [2, 32], strides = [1, 1]} : vector<2x128xf32> to vector<2x32xf32>
    %109 = arith.mulf %106, %73 : vector<2x32xf32>
    %110 = arith.mulf %105, %107 : vector<2x32xf32>
    %111 = arith.addf %109, %110 : vector<2x32xf32>
    %112 = math.tanh %111 : vector<2x32xf32>
    %113 = arith.mulf %108, %112 : vector<2x32xf32>
    %c2 = arith.constant 2 : index
    %c0_26 = arith.constant 0 : index
    %114 = vector.load %arg3[%c2, %c0_26] : memref<16x32xf32, #tpu.memory_space<vmem>>, vector<2x32xf32>
    tpu.vector_store %arg3[%c2, %c0_26], %113 {strides = array<i32>} : memref<16x32xf32, #tpu.memory_space<vmem>>, vector<2x32xf32>,
    %cst_27 = arith.constant dense<0.000000e+00> : vector<2x128xf32>
    %115 = tpu.matmul %93, %1, %cst_27 {dimension_numbers = #tpu.dot_dimension_numbers<[1], [0], [0], [1], [0, 0, 1, 1], [], []>} : vector<2x32xf32>, vector<32x128xf32>, vector<2x128xf32> -> vector<2x128xf32>
    %116 = arith.addf %13, %115 : vector<2x128xf32>
    %117 = arith.negf %116 : vector<2x128xf32>
    %118 = math.exp %117 : vector<2x128xf32>
    %cst_28 = arith.constant 1.000000e+00 : f32
    %119 = vector.broadcast %cst_28 : f32 to vector<2x128xf32>
    %120 = arith.addf %119, %118 : vector<2x128xf32>
    %121 = arith.divf %119, %120 : vector<2x128xf32>
    %122 = math.tanh %116 : vector<2x128xf32>
    %123 = vector.extract_strided_slice %121 {offsets = [0, 0], sizes = [2, 32], strides = [1, 1]} : vector<2x128xf32> to vector<2x32xf32>
    %124 = vector.extract_strided_slice %121 {offsets = [0, 32], sizes = [2, 32], strides = [1, 1]} : vector<2x128xf32> to vector<2x32xf32>
    %125 = vector.extract_strided_slice %122 {offsets = [0, 64], sizes = [2, 32], strides = [1, 1]} : vector<2x128xf32> to vector<2x32xf32>
    %126 = vector.extract_strided_slice %121 {offsets = [0, 96], sizes = [2, 32], strides = [1, 1]} : vector<2x128xf32> to vector<2x32xf32>
    %127 = arith.mulf %124, %91 : vector<2x32xf32>
    %128 = arith.mulf %123, %125 : vector<2x32xf32>
    %129 = arith.addf %127, %128 : vector<2x32xf32>
    %130 = math.tanh %129 : vector<2x32xf32>
    %131 = arith.mulf %126, %130 : vector<2x32xf32>
    %cst_29 = arith.constant dense<0.000000e+00> : vector<2x128xf32>
    %132 = tpu.matmul %93, %3, %cst_29 {dimension_numbers = #tpu.dot_dimension_numbers<[1], [0], [0], [1], [0, 0, 1, 1], [], []>} : vector<2x32xf32>, vector<32x128xf32>, vector<2x128xf32> -> vector<2x128xf32>
    %133 = vector.broadcast %5 : vector<1x128xf32> to vector<2x128xf32>
    %134 = arith.addf %133, %132 : vector<2x128xf32>
    %cst_30 = arith.constant dense<0.000000e+00> : vector<2x128xf32>
    %135 = tpu.matmul %113, %4, %cst_30 {dimension_numbers = #tpu.dot_dimension_numbers<[1], [0], [0], [1], [0, 0, 1, 1], [], []>} : vector<2x32xf32>, vector<32x128xf32>, vector<2x128xf32> -> vector<2x128xf32>
    %136 = arith.addf %134, %135 : vector<2x128xf32>
    %137 = arith.negf %136 : vector<2x128xf32>
    %138 = math.exp %137 : vector<2x128xf32>
    %cst_31 = arith.constant 1.000000e+00 : f32
    %139 = vector.broadcast %cst_31 : f32 to vector<2x128xf32>
    %140 = arith.addf %139, %138 : vector<2x128xf32>
    %141 = arith.divf %139, %140 : vector<2x128xf32>
    %142 = math.tanh %136 : vector<2x128xf32>
    %143 = vector.extract_strided_slice %141 {offsets = [0, 0], sizes = [2, 32], strides = [1, 1]} : vector<2x128xf32> to vector<2x32xf32>
    %144 = vector.extract_strided_slice %141 {offsets = [0, 32], sizes = [2, 32], strides = [1, 1]} : vector<2x128xf32> to vector<2x32xf32>
    %145 = vector.extract_strided_slice %142 {offsets = [0, 64], sizes = [2, 32], strides = [1, 1]} : vector<2x128xf32> to vector<2x32xf32>
    %146 = vector.extract_strided_slice %141 {offsets = [0, 96], sizes = [2, 32], strides = [1, 1]} : vector<2x128xf32> to vector<2x32xf32>
    %147 = arith.mulf %144, %111 : vector<2x32xf32>
    %148 = arith.mulf %143, %145 : vector<2x32xf32>
    %149 = arith.addf %147, %148 : vector<2x32xf32>
    %150 = math.tanh %149 : vector<2x32xf32>
    %151 = arith.mulf %146, %150 : vector<2x32xf32>
    %c4 = arith.constant 4 : index
    %c0_32 = arith.constant 0 : index
    %152 = vector.load %arg3[%c4, %c0_32] : memref<16x32xf32, #tpu.memory_space<vmem>>, vector<2x32xf32>
    tpu.vector_store %arg3[%c4, %c0_32], %151 {strides = array<i32>} : memref<16x32xf32, #tpu.memory_space<vmem>>, vector<2x32xf32>,
    %cst_33 = arith.constant dense<0.000000e+00> : vector<2x128xf32>
    %153 = tpu.matmul %131, %1, %cst_33 {dimension_numbers = #tpu.dot_dimension_numbers<[1], [0], [0], [1], [0, 0, 1, 1], [], []>} : vector<2x32xf32>, vector<32x128xf32>, vector<2x128xf32> -> vector<2x128xf32>
    %154 = arith.addf %14, %153 : vector<2x128xf32>
    %155 = arith.negf %154 : vector<2x128xf32>
    %156 = math.exp %155 : vector<2x128xf32>
    %cst_34 = arith.constant 1.000000e+00 : f32
    %157 = vector.broadcast %cst_34 : f32 to vector<2x128xf32>
    %158 = arith.addf %157, %156 : vector<2x128xf32>
    %159 = arith.divf %157, %158 : vector<2x128xf32>
    %160 = math.tanh %154 : vector<2x128xf32>
    %161 = vector.extract_strided_slice %159 {offsets = [0, 0], sizes = [2, 32], strides = [1, 1]} : vector<2x128xf32> to vector<2x32xf32>
    %162 = vector.extract_strided_slice %159 {offsets = [0, 32], sizes = [2, 32], strides = [1, 1]} : vector<2x128xf32> to vector<2x32xf32>
    %163 = vector.extract_strided_slice %160 {offsets = [0, 64], sizes = [2, 32], strides = [1, 1]} : vector<2x128xf32> to vector<2x32xf32>
    %164 = vector.extract_strided_slice %159 {offsets = [0, 96], sizes = [2, 32], strides = [1, 1]} : vector<2x128xf32> to vector<2x32xf32>
    %165 = arith.mulf %162, %129 : vector<2x32xf32>
    %166 = arith.mulf %161, %163 : vector<2x32xf32>
    %167 = arith.addf %165, %166 : vector<2x32xf32>
    %168 = math.tanh %167 : vector<2x32xf32>
    %169 = arith.mulf %164, %168 : vector<2x32xf32>
    %cst_35 = arith.constant dense<0.000000e+00> : vector<2x128xf32>
    %170 = tpu.matmul %131, %3, %cst_35 {dimension_numbers = #tpu.dot_dimension_numbers<[1], [0], [0], [1], [0, 0, 1, 1], [], []>} : vector<2x32xf32>, vector<32x128xf32>, vector<2x128xf32> -> vector<2x128xf32>
    %171 = vector.broadcast %5 : vector<1x128xf32> to vector<2x128xf32>
    %172 = arith.addf %171, %170 : vector<2x128xf32>
    %cst_36 = arith.constant dense<0.000000e+00> : vector<2x128xf32>
    %173 = tpu.matmul %151, %4, %cst_36 {dimension_numbers = #tpu.dot_dimension_numbers<[1], [0], [0], [1], [0, 0, 1, 1], [], []>} : vector<2x32xf32>, vector<32x128xf32>, vector<2x128xf32> -> vector<2x128xf32>
    %174 = arith.addf %172, %173 : vector<2x128xf32>
    %175 = arith.negf %174 : vector<2x128xf32>
    %176 = math.exp %175 : vector<2x128xf32>
    %cst_37 = arith.constant 1.000000e+00 : f32
    %177 = vector.broadcast %cst_37 : f32 to vector<2x128xf32>
    %178 = arith.addf %177, %176 : vector<2x128xf32>
    %179 = arith.divf %177, %178 : vector<2x128xf32>
    %180 = math.tanh %174 : vector<2x128xf32>
    %181 = vector.extract_strided_slice %179 {offsets = [0, 0], sizes = [2, 32], strides = [1, 1]} : vector<2x128xf32> to vector<2x32xf32>
    %182 = vector.extract_strided_slice %179 {offsets = [0, 32], sizes = [2, 32], strides = [1, 1]} : vector<2x128xf32> to vector<2x32xf32>
    %183 = vector.extract_strided_slice %180 {offsets = [0, 64], sizes = [2, 32], strides = [1, 1]} : vector<2x128xf32> to vector<2x32xf32>
    %184 = vector.extract_strided_slice %179 {offsets = [0, 96], sizes = [2, 32], strides = [1, 1]} : vector<2x128xf32> to vector<2x32xf32>
    %185 = arith.mulf %182, %149 : vector<2x32xf32>
    %186 = arith.mulf %181, %183 : vector<2x32xf32>
    %187 = arith.addf %185, %186 : vector<2x32xf32>
    %188 = math.tanh %187 : vector<2x32xf32>
    %189 = arith.mulf %184, %188 : vector<2x32xf32>
    %c6 = arith.constant 6 : index
    %c0_38 = arith.constant 0 : index
    %190 = vector.load %arg3[%c6, %c0_38] : memref<16x32xf32, #tpu.memory_space<vmem>>, vector<2x32xf32>
    tpu.vector_store %arg3[%c6, %c0_38], %189 {strides = array<i32>} : memref<16x32xf32, #tpu.memory_space<vmem>>, vector<2x32xf32>,
    %cst_39 = arith.constant dense<0.000000e+00> : vector<2x128xf32>
    %191 = tpu.matmul %169, %1, %cst_39 {dimension_numbers = #tpu.dot_dimension_numbers<[1], [0], [0], [1], [0, 0, 1, 1], [], []>} : vector<2x32xf32>, vector<32x128xf32>, vector<2x128xf32> -> vector<2x128xf32>
    %192 = arith.addf %15, %191 : vector<2x128xf32>
    %193 = arith.negf %192 : vector<2x128xf32>
    %194 = math.exp %193 : vector<2x128xf32>
    %cst_40 = arith.constant 1.000000e+00 : f32
    %195 = vector.broadcast %cst_40 : f32 to vector<2x128xf32>
    %196 = arith.addf %195, %194 : vector<2x128xf32>
    %197 = arith.divf %195, %196 : vector<2x128xf32>
    %198 = math.tanh %192 : vector<2x128xf32>
    %199 = vector.extract_strided_slice %197 {offsets = [0, 0], sizes = [2, 32], strides = [1, 1]} : vector<2x128xf32> to vector<2x32xf32>
    %200 = vector.extract_strided_slice %197 {offsets = [0, 32], sizes = [2, 32], strides = [1, 1]} : vector<2x128xf32> to vector<2x32xf32>
    %201 = vector.extract_strided_slice %198 {offsets = [0, 64], sizes = [2, 32], strides = [1, 1]} : vector<2x128xf32> to vector<2x32xf32>
    %202 = vector.extract_strided_slice %197 {offsets = [0, 96], sizes = [2, 32], strides = [1, 1]} : vector<2x128xf32> to vector<2x32xf32>
    %203 = arith.mulf %200, %167 : vector<2x32xf32>
    %204 = arith.mulf %199, %201 : vector<2x32xf32>
    %205 = arith.addf %203, %204 : vector<2x32xf32>
    %206 = math.tanh %205 : vector<2x32xf32>
    %207 = arith.mulf %202, %206 : vector<2x32xf32>
    %cst_41 = arith.constant dense<0.000000e+00> : vector<2x128xf32>
    %208 = tpu.matmul %169, %3, %cst_41 {dimension_numbers = #tpu.dot_dimension_numbers<[1], [0], [0], [1], [0, 0, 1, 1], [], []>} : vector<2x32xf32>, vector<32x128xf32>, vector<2x128xf32> -> vector<2x128xf32>
    %209 = vector.broadcast %5 : vector<1x128xf32> to vector<2x128xf32>
    %210 = arith.addf %209, %208 : vector<2x128xf32>
    %cst_42 = arith.constant dense<0.000000e+00> : vector<2x128xf32>
    %211 = tpu.matmul %189, %4, %cst_42 {dimension_numbers = #tpu.dot_dimension_numbers<[1], [0], [0], [1], [0, 0, 1, 1], [], []>} : vector<2x32xf32>, vector<32x128xf32>, vector<2x128xf32> -> vector<2x128xf32>
    %212 = arith.addf %210, %211 : vector<2x128xf32>
    %213 = arith.negf %212 : vector<2x128xf32>
    %214 = math.exp %213 : vector<2x128xf32>
    %cst_43 = arith.constant 1.000000e+00 : f32
    %215 = vector.broadcast %cst_43 : f32 to vector<2x128xf32>
    %216 = arith.addf %215, %214 : vector<2x128xf32>
    %217 = arith.divf %215, %216 : vector<2x128xf32>
    %218 = math.tanh %212 : vector<2x128xf32>
    %219 = vector.extract_strided_slice %217 {offsets = [0, 0], sizes = [2, 32], strides = [1, 1]} : vector<2x128xf32> to vector<2x32xf32>
    %220 = vector.extract_strided_slice %217 {offsets = [0, 32], sizes = [2, 32], strides = [1, 1]} : vector<2x128xf32> to vector<2x32xf32>
    %221 = vector.extract_strided_slice %218 {offsets = [0, 64], sizes = [2, 32], strides = [1, 1]} : vector<2x128xf32> to vector<2x32xf32>
    %222 = vector.extract_strided_slice %217 {offsets = [0, 96], sizes = [2, 32], strides = [1, 1]} : vector<2x128xf32> to vector<2x32xf32>
    %223 = arith.mulf %220, %187 : vector<2x32xf32>
    %224 = arith.mulf %219, %221 : vector<2x32xf32>
    %225 = arith.addf %223, %224 : vector<2x32xf32>
    %226 = math.tanh %225 : vector<2x32xf32>
    %227 = arith.mulf %222, %226 : vector<2x32xf32>
    %c8 = arith.constant 8 : index
    %c0_44 = arith.constant 0 : index
    %228 = vector.load %arg3[%c8, %c0_44] : memref<16x32xf32, #tpu.memory_space<vmem>>, vector<2x32xf32>
    tpu.vector_store %arg3[%c8, %c0_44], %227 {strides = array<i32>} : memref<16x32xf32, #tpu.memory_space<vmem>>, vector<2x32xf32>,
    %cst_45 = arith.constant dense<0.000000e+00> : vector<2x128xf32>
    %229 = tpu.matmul %207, %1, %cst_45 {dimension_numbers = #tpu.dot_dimension_numbers<[1], [0], [0], [1], [0, 0, 1, 1], [], []>} : vector<2x32xf32>, vector<32x128xf32>, vector<2x128xf32> -> vector<2x128xf32>
    %230 = arith.addf %16, %229 : vector<2x128xf32>
    %231 = arith.negf %230 : vector<2x128xf32>
    %232 = math.exp %231 : vector<2x128xf32>
    %cst_46 = arith.constant 1.000000e+00 : f32
    %233 = vector.broadcast %cst_46 : f32 to vector<2x128xf32>
    %234 = arith.addf %233, %232 : vector<2x128xf32>
    %235 = arith.divf %233, %234 : vector<2x128xf32>
    %236 = math.tanh %230 : vector<2x128xf32>
    %237 = vector.extract_strided_slice %235 {offsets = [0, 0], sizes = [2, 32], strides = [1, 1]} : vector<2x128xf32> to vector<2x32xf32>
    %238 = vector.extract_strided_slice %235 {offsets = [0, 32], sizes = [2, 32], strides = [1, 1]} : vector<2x128xf32> to vector<2x32xf32>
    %239 = vector.extract_strided_slice %236 {offsets = [0, 64], sizes = [2, 32], strides = [1, 1]} : vector<2x128xf32> to vector<2x32xf32>
    %240 = vector.extract_strided_slice %235 {offsets = [0, 96], sizes = [2, 32], strides = [1, 1]} : vector<2x128xf32> to vector<2x32xf32>
    %241 = arith.mulf %238, %205 : vector<2x32xf32>
    %242 = arith.mulf %237, %239 : vector<2x32xf32>
    %243 = arith.addf %241, %242 : vector<2x32xf32>
    %244 = math.tanh %243 : vector<2x32xf32>
    %245 = arith.mulf %240, %244 : vector<2x32xf32>
    %cst_47 = arith.constant dense<0.000000e+00> : vector<2x128xf32>
    %246 = tpu.matmul %207, %3, %cst_47 {dimension_numbers = #tpu.dot_dimension_numbers<[1], [0], [0], [1], [0, 0, 1, 1], [], []>} : vector<2x32xf32>, vector<32x128xf32>, vector<2x128xf32> -> vector<2x128xf32>
    %247 = vector.broadcast %5 : vector<1x128xf32> to vector<2x128xf32>
    %248 = arith.addf %247, %246 : vector<2x128xf32>
    %cst_48 = arith.constant dense<0.000000e+00> : vector<2x128xf32>
    %249 = tpu.matmul %227, %4, %cst_48 {dimension_numbers = #tpu.dot_dimension_numbers<[1], [0], [0], [1], [0, 0, 1, 1], [], []>} : vector<2x32xf32>, vector<32x128xf32>, vector<2x128xf32> -> vector<2x128xf32>
    %250 = arith.addf %248, %249 : vector<2x128xf32>
    %251 = arith.negf %250 : vector<2x128xf32>
    %252 = math.exp %251 : vector<2x128xf32>
    %cst_49 = arith.constant 1.000000e+00 : f32
    %253 = vector.broadcast %cst_49 : f32 to vector<2x128xf32>
    %254 = arith.addf %253, %252 : vector<2x128xf32>
    %255 = arith.divf %253, %254 : vector<2x128xf32>
    %256 = math.tanh %250 : vector<2x128xf32>
    %257 = vector.extract_strided_slice %255 {offsets = [0, 0], sizes = [2, 32], strides = [1, 1]} : vector<2x128xf32> to vector<2x32xf32>
    %258 = vector.extract_strided_slice %255 {offsets = [0, 32], sizes = [2, 32], strides = [1, 1]} : vector<2x128xf32> to vector<2x32xf32>
    %259 = vector.extract_strided_slice %256 {offsets = [0, 64], sizes = [2, 32], strides = [1, 1]} : vector<2x128xf32> to vector<2x32xf32>
    %260 = vector.extract_strided_slice %255 {offsets = [0, 96], sizes = [2, 32], strides = [1, 1]} : vector<2x128xf32> to vector<2x32xf32>
    %261 = arith.mulf %258, %225 : vector<2x32xf32>
    %262 = arith.mulf %257, %259 : vector<2x32xf32>
    %263 = arith.addf %261, %262 : vector<2x32xf32>
    %264 = math.tanh %263 : vector<2x32xf32>
    %265 = arith.mulf %260, %264 : vector<2x32xf32>
    %c10 = arith.constant 10 : index
    %c0_50 = arith.constant 0 : index
    %266 = vector.load %arg3[%c10, %c0_50] : memref<16x32xf32, #tpu.memory_space<vmem>>, vector<2x32xf32>
    tpu.vector_store %arg3[%c10, %c0_50], %265 {strides = array<i32>} : memref<16x32xf32, #tpu.memory_space<vmem>>, vector<2x32xf32>,
    %cst_51 = arith.constant dense<0.000000e+00> : vector<2x128xf32>
    %267 = tpu.matmul %245, %1, %cst_51 {dimension_numbers = #tpu.dot_dimension_numbers<[1], [0], [0], [1], [0, 0, 1, 1], [], []>} : vector<2x32xf32>, vector<32x128xf32>, vector<2x128xf32> -> vector<2x128xf32>
    %268 = arith.addf %17, %267 : vector<2x128xf32>
    %269 = arith.negf %268 : vector<2x128xf32>
    %270 = math.exp %269 : vector<2x128xf32>
    %cst_52 = arith.constant 1.000000e+00 : f32
    %271 = vector.broadcast %cst_52 : f32 to vector<2x128xf32>
    %272 = arith.addf %271, %270 : vector<2x128xf32>
    %273 = arith.divf %271, %272 : vector<2x128xf32>
    %274 = math.tanh %268 : vector<2x128xf32>
    %275 = vector.extract_strided_slice %273 {offsets = [0, 0], sizes = [2, 32], strides = [1, 1]} : vector<2x128xf32> to vector<2x32xf32>
    %276 = vector.extract_strided_slice %273 {offsets = [0, 32], sizes = [2, 32], strides = [1, 1]} : vector<2x128xf32> to vector<2x32xf32>
    %277 = vector.extract_strided_slice %274 {offsets = [0, 64], sizes = [2, 32], strides = [1, 1]} : vector<2x128xf32> to vector<2x32xf32>
    %278 = vector.extract_strided_slice %273 {offsets = [0, 96], sizes = [2, 32], strides = [1, 1]} : vector<2x128xf32> to vector<2x32xf32>
    %279 = arith.mulf %276, %243 : vector<2x32xf32>
    %280 = arith.mulf %275, %277 : vector<2x32xf32>
    %281 = arith.addf %279, %280 : vector<2x32xf32>
    %282 = math.tanh %281 : vector<2x32xf32>
    %283 = arith.mulf %278, %282 : vector<2x32xf32>
    %cst_53 = arith.constant dense<0.000000e+00> : vector<2x128xf32>
    %284 = tpu.matmul %245, %3, %cst_53 {dimension_numbers = #tpu.dot_dimension_numbers<[1], [0], [0], [1], [0, 0, 1, 1], [], []>} : vector<2x32xf32>, vector<32x128xf32>, vector<2x128xf32> -> vector<2x128xf32>
    %285 = vector.broadcast %5 : vector<1x128xf32> to vector<2x128xf32>
    %286 = arith.addf %285, %284 : vector<2x128xf32>
    %cst_54 = arith.constant dense<0.000000e+00> : vector<2x128xf32>
    %287 = tpu.matmul %265, %4, %cst_54 {dimension_numbers = #tpu.dot_dimension_numbers<[1], [0], [0], [1], [0, 0, 1, 1], [], []>} : vector<2x32xf32>, vector<32x128xf32>, vector<2x128xf32> -> vector<2x128xf32>
    %288 = arith.addf %286, %287 : vector<2x128xf32>
    %289 = arith.negf %288 : vector<2x128xf32>
    %290 = math.exp %289 : vector<2x128xf32>
    %cst_55 = arith.constant 1.000000e+00 : f32
    %291 = vector.broadcast %cst_55 : f32 to vector<2x128xf32>
    %292 = arith.addf %291, %290 : vector<2x128xf32>
    %293 = arith.divf %291, %292 : vector<2x128xf32>
    %294 = math.tanh %288 : vector<2x128xf32>
    %295 = vector.extract_strided_slice %293 {offsets = [0, 0], sizes = [2, 32], strides = [1, 1]} : vector<2x128xf32> to vector<2x32xf32>
    %296 = vector.extract_strided_slice %293 {offsets = [0, 32], sizes = [2, 32], strides = [1, 1]} : vector<2x128xf32> to vector<2x32xf32>
    %297 = vector.extract_strided_slice %294 {offsets = [0, 64], sizes = [2, 32], strides = [1, 1]} : vector<2x128xf32> to vector<2x32xf32>
    %298 = vector.extract_strided_slice %293 {offsets = [0, 96], sizes = [2, 32], strides = [1, 1]} : vector<2x128xf32> to vector<2x32xf32>
    %299 = arith.mulf %296, %263 : vector<2x32xf32>
    %300 = arith.mulf %295, %297 : vector<2x32xf32>
    %301 = arith.addf %299, %300 : vector<2x32xf32>
    %302 = math.tanh %301 : vector<2x32xf32>
    %303 = arith.mulf %298, %302 : vector<2x32xf32>
    %c12 = arith.constant 12 : index
    %c0_56 = arith.constant 0 : index
    %304 = vector.load %arg3[%c12, %c0_56] : memref<16x32xf32, #tpu.memory_space<vmem>>, vector<2x32xf32>
    tpu.vector_store %arg3[%c12, %c0_56], %303 {strides = array<i32>} : memref<16x32xf32, #tpu.memory_space<vmem>>, vector<2x32xf32>,
    %cst_57 = arith.constant dense<0.000000e+00> : vector<2x128xf32>
    %305 = tpu.matmul %283, %3, %cst_57 {dimension_numbers = #tpu.dot_dimension_numbers<[1], [0], [0], [1], [0, 0, 1, 1], [], []>} : vector<2x32xf32>, vector<32x128xf32>, vector<2x128xf32> -> vector<2x128xf32>
    %306 = vector.broadcast %5 : vector<1x128xf32> to vector<2x128xf32>
    %307 = arith.addf %306, %305 : vector<2x128xf32>
    %cst_58 = arith.constant dense<0.000000e+00> : vector<2x128xf32>
    %308 = tpu.matmul %303, %4, %cst_58 {dimension_numbers = #tpu.dot_dimension_numbers<[1], [0], [0], [1], [0, 0, 1, 1], [], []>} : vector<2x32xf32>, vector<32x128xf32>, vector<2x128xf32> -> vector<2x128xf32>
    %309 = arith.addf %307, %308 : vector<2x128xf32>
    %310 = arith.negf %309 : vector<2x128xf32>
    %311 = math.exp %310 : vector<2x128xf32>
    %cst_59 = arith.constant 1.000000e+00 : f32
    %312 = vector.broadcast %cst_59 : f32 to vector<2x128xf32>
    %313 = arith.addf %312, %311 : vector<2x128xf32>
    %314 = arith.divf %312, %313 : vector<2x128xf32>
    %315 = math.tanh %309 : vector<2x128xf32>
    %316 = vector.extract_strided_slice %314 {offsets = [0, 0], sizes = [2, 32], strides = [1, 1]} : vector<2x128xf32> to vector<2x32xf32>
    %317 = vector.extract_strided_slice %314 {offsets = [0, 32], sizes = [2, 32], strides = [1, 1]} : vector<2x128xf32> to vector<2x32xf32>
    %318 = vector.extract_strided_slice %315 {offsets = [0, 64], sizes = [2, 32], strides = [1, 1]} : vector<2x128xf32> to vector<2x32xf32>
    %319 = vector.extract_strided_slice %314 {offsets = [0, 96], sizes = [2, 32], strides = [1, 1]} : vector<2x128xf32> to vector<2x32xf32>
    %320 = arith.mulf %317, %301 : vector<2x32xf32>
    %321 = arith.mulf %316, %318 : vector<2x32xf32>
    %322 = arith.addf %320, %321 : vector<2x32xf32>
    %323 = math.tanh %322 : vector<2x32xf32>
    %324 = arith.mulf %319, %323 : vector<2x32xf32>
    %c14 = arith.constant 14 : index
    %c0_60 = arith.constant 0 : index
    %325 = vector.load %arg3[%c14, %c0_60] : memref<16x32xf32, #tpu.memory_space<vmem>>, vector<2x32xf32>
    tpu.vector_store %arg3[%c14, %c0_60], %324 {strides = array<i32>} : memref<16x32xf32, #tpu.memory_space<vmem>>, vector<2x32xf32>,
    %c0_61 = arith.constant 0 : index
    %c0_62 = arith.constant 0 : index
    %326 = vector.load %arg3[%c0_61, %c0_62] : memref<16x32xf32, #tpu.memory_space<vmem>>, vector<16x32xf32>
    %c128 = arith.constant 128 : index
    %c0_63 = arith.constant 0 : index
    %327 = vector.load %arg1[%c128, %c0_63] : memref<232x128xf32, #tpu.memory_space<vmem>>, vector<32x128xf32>
    %328 = vector.extract_strided_slice %327 {offsets = [0, 0], sizes = [32, 32], strides = [1, 1]} : vector<32x128xf32> to vector<32x32xf32>
    %c160 = arith.constant 160 : index
    %c0_64 = arith.constant 0 : index
    %329 = vector.load %arg1[%c160, %c0_64] : memref<232x128xf32, #tpu.memory_space<vmem>>, vector<1x128xf32>
    %330 = vector.extract_strided_slice %329 {offsets = [0, 0], sizes = [1, 32], strides = [1, 1]} : vector<1x128xf32> to vector<1x32xf32>
    %cst_65 = arith.constant dense<0.000000e+00> : vector<16x32xf32>
    %331 = tpu.matmul %326, %328, %cst_65 {dimension_numbers = #tpu.dot_dimension_numbers<[1], [0], [0], [1], [0, 0, 1, 1], [], []>} : vector<16x32xf32>, vector<32x32xf32>, vector<16x32xf32> -> vector<16x32xf32>
    %332 = vector.broadcast %330 : vector<1x32xf32> to vector<16x32xf32>
    %333 = arith.addf %331, %332 : vector<16x32xf32>
    %cst_66 = arith.constant 0.000000e+00 : f32
    %334 = vector.broadcast %cst_66 : f32 to vector<16x32xf32>
    %335 = arith.maximumf %333, %334 : vector<16x32xf32>
    %c168 = arith.constant 168 : index
    %c0_67 = arith.constant 0 : index
    %336 = vector.load %arg1[%c168, %c0_67] : memref<232x128xf32, #tpu.memory_space<vmem>>, vector<32x128xf32>
    %337 = vector.extract_strided_slice %336 {offsets = [0, 0], sizes = [32, 16], strides = [1, 1]} : vector<32x128xf32> to vector<32x16xf32>
    %c200 = arith.constant 200 : index
    %c0_68 = arith.constant 0 : index
    %338 = vector.load %arg1[%c200, %c0_68] : memref<232x128xf32, #tpu.memory_space<vmem>>, vector<1x128xf32>
    %339 = vector.extract_strided_slice %338 {offsets = [0, 0], sizes = [1, 16], strides = [1, 1]} : vector<1x128xf32> to vector<1x16xf32>
    %cst_69 = arith.constant dense<0.000000e+00> : vector<16x16xf32>
    %340 = tpu.matmul %335, %337, %cst_69 {dimension_numbers = #tpu.dot_dimension_numbers<[1], [0], [0], [1], [0, 0, 1, 1], [], []>} : vector<16x32xf32>, vector<32x16xf32>, vector<16x16xf32> -> vector<16x16xf32>
    %341 = vector.broadcast %339 : vector<1x16xf32> to vector<16x16xf32>
    %342 = arith.addf %340, %341 : vector<16x16xf32>
    %cst_70 = arith.constant 0.000000e+00 : f32
    %343 = vector.broadcast %cst_70 : f32 to vector<16x16xf32>
    %344 = arith.maximumf %342, %343 : vector<16x16xf32>
    %c208 = arith.constant 208 : index
    %c0_71 = arith.constant 0 : index
    %345 = vector.load %arg1[%c208, %c0_71] : memref<232x128xf32, #tpu.memory_space<vmem>>, vector<16x128xf32>
    %c224 = arith.constant 224 : index
    %c0_72 = arith.constant 0 : index
    %346 = vector.load %arg1[%c224, %c0_72] : memref<232x128xf32, #tpu.memory_space<vmem>>, vector<1x128xf32>
    %cst_73 = arith.constant dense<0.000000e+00> : vector<16x128xf32>
    %347 = tpu.matmul %344, %345, %cst_73 {dimension_numbers = #tpu.dot_dimension_numbers<[1], [0], [0], [1], [0, 0, 1, 1], [], []>} : vector<16x16xf32>, vector<16x128xf32>, vector<16x128xf32> -> vector<16x128xf32>
    %348 = vector.broadcast %346 : vector<1x128xf32> to vector<16x128xf32>
    %349 = arith.addf %347, %348 : vector<16x128xf32>
    %c0_74 = arith.constant 0 : index
    %c0_75 = arith.constant 0 : index
    %350 = vector.load %arg2[%c0_74, %c0_75] : memref<16x128xf32, #tpu.memory_space<vmem>>, vector<16x128xf32>
    tpu.vector_store %arg2[%c0_74, %c0_75], %349 {strides = array<i32>} : memref<16x128xf32, #tpu.memory_space<vmem>>, vector<16x128xf32>,
    return
  }
}

</mosaic_0001>

<bundles_post_ra>
// kernel: mocap2audio_forward.1
= control target key start
LH: loop header
LB: loop body
LE: loop exit
PB: predicated region body
PF: predicated region fallthrough
CT: control target
= control target key end

     0   :  { %7 = vsyncpa [#allocation4], 0  ;;  %s3307_s9 = smov [#allocation3]   ;;  %s3768_s0 = inlined_call_operand.vmem [shape: f32[16,16], index: 0, kind: input, shape index: {}]   ;;  %s3769_s1 = inlined_call_operand.hbm [shape: f32[232,128], index: 1, kind: input, shape index: {}]   ;;  %s3770_s2 = inlined_call_operand.vmem [shape: f32[16,128], index: 2, kind: output, shape index: {}]  }
   0x1   :  { %s15_s10 = sshll.u32 %s3307_s9, 4  ;;  %s16_s10 = int_to_ptr.vmem [resolvable:$true] %s15_s10 }
   0x2   :  { %s3293_s11 = scalar_lea.vmem %s16_s10, 3712  ;;  %p3298_p1 = scmp.lt.s32.totalorder %s16_s10, %s16_s10 }
   0x3   :  { %p3294_p0 = scmp.ne.s32.totalorder %s16_s10, %s3293_s11  ;;  %p3299_p2 = scmp.lt.s32.totalorder %s3293_s11, %s3293_s11 }
   0x5   :  { %p3300_p3 = por %p3299_p2, %p3298_p1 }
   0x7   :  { %p3301_p4 = pnand %p3300_p3, %p3294_p0 }
   0x9   :  { %3304 = shalt.err (!%p3301_p4)
}
   0xa   :  { %s3308_s12 = smov 128   ;;  %s3309_s13 = smov 8  }
   0xb   :  { %21 = dma.hbm_to_vmem [thread:$0]  %s3769_s1, 3712, %s16_s10, [#allocation4], %s3308_s12, %s3308_s12, %s3309_s13  }
   0xc   :  { %3305 = dma.done.wait [#allocation4], 3712  }
   0xd   :  { %3306 = vsyncadd [#allocation4], 4294963584  ;;  %v3310_v0 = vmov 0.0   ;;  %vm3311_vm0 = vmmov 0   ;;  %v26_v1 = vld [vmem:[#allocation3 + $0x8] sm:$0xff]  ;;  %v25_v3 = vld [vmem:[#allocation3] sm:$0xff] }
   0xe   :  { %2844 = vmatprep.subr.mxu1 %v3310_v0  ;;  %2852 = vmatprep.mubr.msk.f32.mxu1 %vm3311_vm0, %v3310_v0  ;;  %v3335_v2 = vld [vmem:[#allocation3 + $0x28] sm:$0xff]  ;;  %v3338_v4 = vld [vmem:[#allocation3 + $0x20] sm:$0xff]  ;;  %v41_v5 = vld [vmem:[%s3768_s0] sm:$0xff]  ;;  %vm47_vm1 = vcmask 130048   ;;  %s3313_s19 = smov 32   ;;  %vm129_vm2 = vcmask 261120  }
   0xf   :  { %2837 = vmatprep.subr.mxu0 %v26_v1  ;;  %2845 = vmatpush3.msra.mxu1 %v3335_v2  ;;  %v42_v6 = vld [vmem:[%s3768_s0 + $0x8] sm:$0xff]  ;;  %v3353_v8 = vld [vmem:[#allocation3 + $0x10] sm:$0xff]  ;;  %s3312_s0 = smov 64   ;;  %v3385_v28 = vld [vmem:[#allocation3 + $0x48] sm:$0xff]  ;;  %vm508_vm3 = vcmask 254976  }
  0x10   :  { %2838 = vmatpush3.msra.mxu0 %v26_v1  ;;  %2846 = vmatprep.subr.mxu1 %v3310_v0  ;;  %v3348_v7 = vld [vmem:[#allocation3 + $0x18] sm:$0xff]  ;;  %v2646_v9 = vld [vmem:[#allocation3 + $0x30] ss:$0 sm:$0xff]  ;;  %v3389_v29 = vld [vmem:[#allocation3 + $0x40] sm:$0xff] }
  0x11   :  { %2839 = vmatprep.subr.mxu0 %v25_v3  ;;  %2847 = vmatpush3.msra.mxu1 %v3338_v4  ;;  %v3383_v27 = vld [vmem:[#allocation3 + $0x50] sm:$0xff]  ;;  %v3393_v30 = vld [vmem:[#allocation3 + $0x38] sm:$0xff]  ;;  %v3405_v36 = vld [vmem:[#allocation3 + $0x68] sm:$0xff] }
  0x12   :  { %2840 = vmatpush3.msra.mxu0 %v25_v3  ;;  %2841 = vmatprep.mubr.msk.f32.mxu0 %vm47_vm1, %v41_v5  ;;  %v3401_v34 = vld [vmem:[#allocation3 + $0x70] sm:$0xff]  ;;  %v3411_v37 = vld [vmem:[#allocation3 + $0x60] sm:$0xff]  ;;  %v3417_v38 = vld [vmem:[#allocation3 + $0x58] sm:$0xff] }
  0x13   :  { %2848 = vmatprep.subr.mxu1 %v3310_v0  ;;  %2842 = vmatmul.mubr.msk.f32.vlgmr.msra.gmra.mxu0 %vm47_vm1, %v42_v6  ;;  %v3443_v45 = vld [vmem:[#allocation3 + $0x78] ss:$0 sm:$0xff] }
  0x14   :  { %2849 = vmatpush3.msra.mxu1 %v3348_v7  ;;  %2855 = vmatprep.subr.mxu0 %v3310_v0 }
  0x15   :  { %2850 = vmatprep.subr.mxu1 %v3310_v0  ;;  %2856 = vmatpush3.msra.mxu0 %v3335_v2 }
  0x16   :  { %2851 = vmatpush3.msra.mxu1 %v3353_v8  ;;  %2857 = vmatprep.subr.mxu0 %v3310_v0 }
  0x17   :  { %2853 = vmatmul.mubr.f32.vlgmr.msra.gmra.mxu1 %v3310_v0  ;;  %2866 = vmatprep.subr.mxu1 %v3310_v0 }
  0x18   :  { %2858 = vmatpush3.msra.mxu0 %v3338_v4  ;;  %2863 = vmatprep.mubr.msk.f32.mxu0 %vm3311_vm0, %v3310_v0 }
  0x19   :  { %2859 = vmatprep.subr.mxu0 %v3310_v0  ;;  %2874 = vmatprep.mubr.msk.f32.mxu1 %vm3311_vm0, %v3310_v0 }
  0x1a   :  { %2860 = vmatpush3.msra.mxu0 %v3348_v7  ;;  %2867 = vmatpush3.msra.mxu1 %v3383_v27 }
  0x1b   :  { %2861 = vmatprep.subr.mxu0 %v3310_v0  ;;  %2868 = vmatprep.subr.mxu1 %v3310_v0 }
  0x1c   :  { %2862 = vmatpush3.msra.mxu0 %v3353_v8  ;;  %2869 = vmatpush3.msra.mxu1 %v3385_v28 }
  0x1d   :  { %2877 = vmatprep.subr.mxu0 %v3310_v0  ;;  %2870 = vmatprep.subr.mxu1 %v3310_v0 }
  0x1e   :  { %2871 = vmatpush3.msra.mxu1 %v3389_v29 }
  0x1f   :  { %2872 = vmatprep.subr.mxu1 %v3310_v0 }
  0x20   :  { %2873 = vmatpush3.msra.mxu1 %v3393_v30 }
  0x21   :  { %2888 = vmatprep.subr.mxu1 %v3310_v0 }
  0xd3   :  { %v2843_v10 = vpop.f32.mrf.mxu0 }
  0xd4   :  { %v3373_v11 = vadd.f32 %v2843_v10, %v2646_v9 }
  0xd5   :  { %v120_v12 = vpop.f32.mrf.mxu0 }
  0xd6   :  { %v3375_v13 = vadd.f32 %v2646_v9, %v120_v12 }
  0xd7   :  { %v199_v14 = vpop.f32.mrf.mxu1 }
  0xd8   :  { %v203_v15 = vadd.f32 %v199_v14, %v3375_v13 }
  0xd9   :  { %v2854_v16 = vpop.f32.mrf.mxu1 }
  0xda   :  { %3144 = vtanh.f32 %v203_v15  ;;  %v2649_v18 = vmul.f32 -1.442695, %v203_v15 }
  0xdc   :  { %3146 = vpow2.f32 %v2649_v18 }
  0xe7   :  { %v3145_v17 = vpop.eup %3144 }
  0xe8   :  { %213 = vrot.lane.b32.xlu0 %v3145_v17, %s3312_s0 }
  0xe9   :  { %v3147_v19 = vpop.eup %3146 }
  0xea   :  { %v207_v20 = vadd.f32 1.0, %v3147_v19 }
  0xec   :  { %3148 = vrcp.f32 %v207_v20 }
  0xf9   :  { %v3149_v21 = vpop.eup %3148 }
  0xfa   :  { %v211_v24 = vmul.f32 0.0, %v3149_v21 }
 0x15a   :  { %v214_v22 = vpop.permute.xlu0 %213 }
 0x15b   :  { %v216_v23 = vmul.f32 %v3149_v21, %v214_v22 }
 0x15d   :  { %218 = vrot.lane.b32.xlu0 %v216_v23, %s3313_s19 }
 0x1cf   :  { %v219_v25 = vpop.permute.xlu0 %218 }
 0x1d0   :  { %v3380_v26 = vadd.f32 %v219_v25, %v211_v24 }
 0x1d2   :  { %3150 = vtanh.f32 %v3380_v26  ;;  %v315_v1 = vrot.slane %v3380_v26, 6 }
 0x1df   :  { %v3151_v31 = vpop.eup %3150 }
 0x1e0   :  { %224 = vrot.lane.b32.xlu1 %v3151_v31, %s3312_s0 }
 0x252   :  { %v225_v32 = vpop.permute.xlu1 %224 }
 0x253   :  { %v227_v33 = vmul.f32 %v3149_v21, %v225_v32 }
 0x255   :  { %229 = vrot.lane.b32.xlu1 %v227_v33, %s3313_s19 }
 0x2c7   :  { %v230_v35 = vpop.permute.xlu1 %229 }
 0x2c8   :  { %2864 = vmatmul.mubr.msk.f32.vlgmr.msra.gmra.mxu0 %vm129_vm2, %v230_v35  ;;  %2875 = vmatmul.mubr.msk.f32.vlgmr.msra.gmra.mxu1 %vm129_vm2, %v230_v35 }
 0x2c9   :  { %2878 = vmatpush3.msra.mxu0 %v3401_v34  ;;  %2885 = vmatprep.mubr.msk.f32.mxu0 %vm3311_vm0, %v3310_v0 }
 0x2ca   :  { %2879 = vmatprep.subr.mxu0 %v3310_v0  ;;  %2889 = vmatpush3.msra.mxu1 %v3335_v2 }
 0x2cb   :  { %2880 = vmatpush3.msra.mxu0 %v3405_v36  ;;  %2890 = vmatprep.subr.mxu1 %v3310_v0 }
 0x2cc   :  { %2881 = vmatprep.subr.mxu0 %v3310_v0  ;;  %2891 = vmatpush3.msra.mxu1 %v3338_v4 }
 0x2cd   :  { %2882 = vmatpush3.msra.mxu0 %v3411_v37  ;;  %2892 = vmatprep.subr.mxu1 %v3310_v0 }
 0x2ce   :  { %2883 = vmatprep.subr.mxu0 %v3310_v0  ;;  %2893 = vmatpush3.msra.mxu1 %v3348_v7 }
 0x2cf   :  { %2884 = vmatpush3.msra.mxu0 %v3417_v38  ;;  %2894 = vmatprep.subr.mxu1 %v3310_v0 }
 0x2d0   :  { %2886 = vmatmul.mubr.f32.vlgmr.msra.gmra.mxu0 %v3310_v0  ;;  %2899 = vmatprep.subr.mxu0 %v3310_v0 }
 0x2d1   :  { %2900 = vmatpush3.msra.mxu0 %v3383_v27  ;;  %2895 = vmatpush3.msra.mxu1 %v3353_v8 }
 0x2d2   :  { %2901 = vmatprep.subr.mxu0 %v3310_v0  ;;  %2896 = vmatprep.mubr.msk.f32.mxu1 %vm3311_vm0, %v3310_v0 }
 0x2d3   :  { %2902 = vmatpush3.msra.mxu0 %v3385_v28  ;;  %2907 = vmatprep.mubr.msk.f32.mxu0 %vm3311_vm0, %v3310_v0 }
 0x2d4   :  { %2903 = vmatprep.subr.mxu0 %v3310_v0  ;;  %2910 = vmatprep.subr.mxu1 %v3310_v0 }
 0x2d5   :  { %2904 = vmatpush3.msra.mxu0 %v3389_v29 }
 0x2d6   :  { %2905 = vmatprep.subr.mxu0 %v3310_v0 }
 0x2d7   :  { %2906 = vmatpush3.msra.mxu0 %v3393_v30 }
 0x2d8   :  { %2921 = vmatprep.subr.mxu0 %v3310_v0 }
 0x388   :  { %v299_v39 = vpop.f32.mrf.mxu0  ;;  %v400_v40 = vpop.f32.mrf.mxu1 }
 0x389   :  { %v304_v41 = vrot.slane %v299_v39, 6  ;;  %v408_v46 = vadd.f32 %v3443_v45, %v400_v40 }
 0x38a   :  { %v2865_v42 = vpop.f32.mrf.mxu0  ;;  %v2876_v43 = vpop.f32.mrf.mxu1 }
 0x38b   :  { %v306_v44 = vadd.f32 %v304_v41, %v3375_v13 }
 0x38d   :  { %3152 = vtanh.f32 %v306_v44  ;;  %v2651_v52 = vmul.f32 -1.442695, %v306_v44 }
 0x390   :  { %v475_v47 = vpop.f32.mrf.mxu0 }
 0x391   :  { %v479_v48 = vadd.f32 %v475_v47, %v408_v46 }
 0x392   :  { %v2887_v49 = vpop.f32.mrf.mxu0 }
 0x393   :  { %3154 = vtanh.f32 %v479_v48  ;;  %v2654_v53 = vmul.f32 -1.442695, %v479_v48 }
 0x394   :  { %3156 = vpow2.f32 %v2651_v52 }
 0x395   :  { %3158 = vpow2.f32 %v2654_v53 }
 0x39a   :  { %v3153_v50 = vpop.eup %3152 }
 0x39b   :  { %319 = vrot.lane.b32.xlu0 %v3153_v50, %s3312_s0 }
 0x3a0   :  { %v3155_v51 = vpop.eup %3154 }
 0x3a1   :  { %489 = vrot.lane.b32.xlu1 %v3155_v51, %s3312_s0  ;;  %v3157_v54 = vpop.eup %3156 }
 0x3a2   :  { %v310_v55 = vadd.f32 1.0, %v3157_v54  ;;  %v3159_v56 = vpop.eup %3158 }
 0x3a3   :  { %v483_v57 = vadd.f32 1.0, %v3159_v56 }
 0x3a4   :  { %3160 = vrcp.f32 %v310_v55 }
 0x3a5   :  { %3162 = vrcp.f32 %v483_v57 }
 0x3b1   :  { %v3161_v58 = vpop.eup %3160 }
 0x3b2   :  { %v3163_v61 = vpop.eup %3162  ;;  %v317_v3 = vmul.f32 %v3161_v58, %v315_v1 }
 0x3b3   :  { %v487_v9 = vmul.f32 0.0, %v3163_v61 }
 0x40d   :  { %v320_v59 = vpop.permute.xlu0 %319 }
 0x40e   :  { %v322_v60 = vmul.f32 %v3161_v58, %v320_v59 }
 0x410   :  { %324 = vrot.lane.b32.xlu0 %v322_v60, %s3313_s19 }
 0x413   :  { %v490_v62 = vpop.permute.xlu1 %489 }
 0x414   :  { %v492_v63 = vmul.f32 %v3163_v61, %v490_v62 }
 0x416   :  { %494 = vrot.lane.b32.xlu1 %v492_v63, %s3313_s19 }
 0x482   :  { %v325_v5 = vpop.permute.xlu0 %324 }
 0x483   :  { %v3451_v6 = vadd.f32 %v325_v5, %v317_v3 }
 0x485   :  { %3164 = vtanh.f32 %v3451_v6  ;;  %v598_v56 = vrot.slane %v3451_v6, 6 }
 0x488   :  { %v495_v10 = vpop.permute.xlu1 %494 }
 0x489   :  { %v3454_v12 = vadd.f32 %v495_v10, %v487_v9 }
 0x48b   :  { %3166 = vtanh.f32 %v3454_v12 }
 0x492   :  { %v3165_v14 = vpop.eup %3164 }
 0x493   :  { %330 = vrot.lane.b32.xlu0 %v3165_v14, %s3312_s0 }
 0x498   :  { %v3167_v15 = vpop.eup %3166 }
 0x499   :  { %500 = vrot.lane.b32.xlu1 %v3167_v15, %s3312_s0 }
 0x505   :  { %v331_v16 = vpop.permute.xlu0 %330 }
 0x506   :  { %v333_v17 = vmul.f32 %v3161_v58, %v331_v16 }
 0x508   :  { %v511_v18 = vrot.slane %v333_v17, 2 }
 0x50a   :  { %512 = vrot.lane.b32.xlu0 %v511_v18, %s3313_s19 }
 0x50b   :  { %v501_v19 = vpop.permute.xlu1 %500 }
 0x50c   :  { %v503_v20 = vmul.f32 %v3163_v61, %v501_v19 }
 0x50e   :  { %505 = vrot.lane.b32.xlu1 %v503_v20, %s3313_s19 }
 0x57c   :  { %v513_v21 = vpop.permute.xlu0 %512 }
 0x57d   :  { %2897 = vmatmul.mubr.msk.f32.vlgmr.msra.gmra.mxu1 %vm129_vm2, %v513_v21  ;;  %2908 = vmatmul.mubr.msk.f32.vlgmr.msra.gmra.mxu0 %vm129_vm2, %v513_v21 }
 0x57e   :  { %2911 = vmatpush3.msra.mxu1 %v3401_v34  ;;  %2918 = vmatprep.mubr.msk.f32.mxu1 %vm3311_vm0, %v3310_v0 }
 0x57f   :  { %2912 = vmatprep.subr.mxu1 %v3310_v0  ;;  %2922 = vmatpush3.msra.mxu0 %v3335_v2 }
 0x580   :  { %2913 = vmatpush3.msra.mxu1 %v3405_v36  ;;  %v506_v22 = vpop.permute.xlu1 %505  ;;  %2923 = vmatprep.subr.mxu0 %v3310_v0 }
 0x581   :  { %509 = vst.msk [vmem:[#allocation2] sm:$0x3] %vm508_vm3, %v506_v22  ;;  %2914 = vmatprep.subr.mxu1 %v3310_v0  ;;  %2924 = vmatpush3.msra.mxu0 %v3338_v4 }
 0x582   :  { %2915 = vmatpush3.msra.mxu1 %v3411_v37  ;;  %2925 = vmatprep.subr.mxu0 %v3310_v0 }
 0x583   :  { %2916 = vmatprep.subr.mxu1 %v3310_v0  ;;  %2926 = vmatpush3.msra.mxu0 %v3348_v7 }
 0x584   :  { %2917 = vmatpush3.msra.mxu1 %v3417_v38  ;;  %2927 = vmatprep.subr.mxu0 %v3310_v0 }
 0x585   :  { %2919 = vmatmul.mubr.msk.f32.vlgmr.msra.gmra.mxu1 %vm129_vm2, %v506_v22  ;;  %2932 = vmatprep.subr.mxu1 %v3310_v0 }
 0x586   :  { %2933 = vmatpush3.msra.mxu1 %v3383_v27  ;;  %2928 = vmatpush3.msra.mxu0 %v3353_v8 }
 0x587   :  { %2934 = vmatprep.subr.mxu1 %v3310_v0  ;;  %2929 = vmatprep.mubr.msk.f32.mxu0 %vm3311_vm0, %v3310_v0 }
 0x588   :  { %2935 = vmatpush3.msra.mxu1 %v3385_v28  ;;  %2943 = vmatprep.subr.mxu0 %v3310_v0 }
 0x589   :  { %2936 = vmatprep.subr.mxu1 %v3310_v0  ;;  %2940 = vmatprep.mubr.msk.f32.mxu1 %vm3311_vm0, %v3310_v0 }
 0x58a   :  { %2937 = vmatpush3.msra.mxu1 %v3389_v29 }
 0x58b   :  { %2938 = vmatprep.subr.mxu1 %v3310_v0 }
 0x58c   :  { %2939 = vmatpush3.msra.mxu1 %v3393_v30 }
 0x58d   :  { %2954 = vmatprep.subr.mxu1 %v3310_v0 }
 0x63d   :  { %v582_v23 = vpop.f32.mrf.mxu1  ;;  %v683_v24 = vpop.f32.mrf.mxu0 }
 0x63e   :  { %v587_v25 = vrot.slane %v582_v23, 4  ;;  %v687_v33 = vadd.f32 %v3443_v45, %v683_v24 }
 0x63f   :  { %v2898_v26 = vpop.f32.mrf.mxu1  ;;  %v2909_v31 = vpop.f32.mrf.mxu0 }
 0x640   :  { %v589_v32 = vadd.f32 %v587_v25, %v3375_v13 }
 0x642   :  { %3168 = vtanh.f32 %v589_v32  ;;  %v2656_v43 = vmul.f32 -1.442695, %v589_v32 }
 0x645   :  { %v756_v35 = vpop.f32.mrf.mxu1 }
 0x646   :  { %v760_v39 = vadd.f32 %v756_v35, %v687_v33 }
 0x647   :  { %v2920_v40 = vpop.f32.mrf.mxu1 }
 0x648   :  { %3170 = vtanh.f32 %v760_v39  ;;  %v2659_v44 = vmul.f32 -1.442695, %v760_v39 }
 0x649   :  { %3172 = vpow2.f32 %v2656_v43 }
 0x64a   :  { %3174 = vpow2.f32 %v2659_v44 }
 0x64f   :  { %v3169_v41 = vpop.eup %3168 }
 0x650   :  { %602 = vrot.lane.b32.xlu0 %v3169_v41, %s3312_s0 }
 0x655   :  { %v3171_v42 = vpop.eup %3170 }
 0x656   :  { %770 = vrot.lane.b32.xlu1 %v3171_v42, %s3312_s0  ;;  %v3173_v46 = vpop.eup %3172 }
 0x657   :  { %v593_v47 = vadd.f32 1.0, %v3173_v46  ;;  %v3175_v48 = vpop.eup %3174 }
 0x658   :  { %v764_v49 = vadd.f32 1.0, %v3175_v48 }
 0x659   :  { %3176 = vrcp.f32 %v593_v47 }
 0x65a   :  { %3178 = vrcp.f32 %v764_v49 }
 0x666   :  { %v3177_v50 = vpop.eup %3176 }
 0x667   :  { %v3179_v53 = vpop.eup %3178  ;;  %v600_v57 = vmul.f32 %v3177_v50, %v598_v56 }
 0x668   :  { %v768_v60 = vmul.f32 %v3179_v53, %v3454_v12 }
 0x6c2   :  { %v603_v51 = vpop.permute.xlu0 %602 }
 0x6c3   :  { %v605_v52 = vmul.f32 %v3177_v50, %v603_v51 }
 0x6c5   :  { %607 = vrot.lane.b32.xlu0 %v605_v52, %s3313_s19 }
 0x6c8   :  { %v771_v54 = vpop.permute.xlu1 %770 }
 0x6c9   :  { %v773_v55 = vmul.f32 %v3179_v53, %v771_v54 }
 0x6cb   :  { %775 = vrot.lane.b32.xlu1 %v773_v55, %s3313_s19 }
 0x737   :  { %v608_v58 = vpop.permute.xlu0 %607 }
 0x738   :  { %v3502_v59 = vadd.f32 %v608_v58, %v600_v57 }
 0x73a   :  { %3180 = vtanh.f32 %v3502_v59  ;;  %v878_v47 = vrot.slane %v3502_v59, 6 }
 0x73d   :  { %v776_v61 = vpop.permute.xlu1 %775 }
 0x73e   :  { %v3506_v62 = vadd.f32 %v776_v61, %v768_v60 }
 0x740   :  { %3182 = vtanh.f32 %v3506_v62 }
 0x747   :  { %v3181_v63 = vpop.eup %3180 }
 0x748   :  { %613 = vrot.lane.b32.xlu0 %v3181_v63, %s3312_s0 }
 0x74d   :  { %v3183_v1 = vpop.eup %3182 }
 0x74e   :  { %781 = vrot.lane.b32.xlu1 %v3183_v1, %s3312_s0 }
 0x7ba   :  { %v614_v3 = vpop.permute.xlu0 %613 }
 0x7bb   :  { %v616_v5 = vmul.f32 %v3177_v50, %v614_v3 }
 0x7bd   :  { %v791_v6 = vrot.slane %v616_v5, 4 }
 0x7bf   :  { %792 = vrot.lane.b32.xlu0 %v791_v6, %s3313_s19 }
 0x7c0   :  { %v782_v9 = vpop.permute.xlu1 %781 }
 0x7c1   :  { %v784_v10 = vmul.f32 %v3179_v53, %v782_v9 }
 0x7c3   :  { %786 = vrot.lane.b32.xlu1 %v784_v10, %s3313_s19 }
 0x831   :  { %v793_v12 = vpop.permute.xlu0 %792 }
 0x832   :  { %2930 = vmatmul.mubr.msk.f32.vlgmr.msra.gmra.mxu0 %vm129_vm2, %v793_v12  ;;  %2941 = vmatmul.mubr.msk.f32.vlgmr.msra.gmra.mxu1 %vm129_vm2, %v793_v12 }
 0x833   :  { %2944 = vmatpush3.msra.mxu0 %v3401_v34  ;;  %2951 = vmatprep.mubr.msk.f32.mxu0 %vm3311_vm0, %v3310_v0 }
 0x834   :  { %2945 = vmatprep.subr.mxu0 %v3310_v0  ;;  %2955 = vmatpush3.msra.mxu1 %v3335_v2 }
 0x835   :  { %2946 = vmatpush3.msra.mxu0 %v3405_v36  ;;  %v787_v14 = vpop.permute.xlu1 %786  ;;  %2956 = vmatprep.subr.mxu1 %v3310_v0 }
 0x836   :  { %789 = vst.msk [vmem:[#allocation2 + $0x2] sm:$0x3] %vm508_vm3, %v787_v14  ;;  %2947 = vmatprep.subr.mxu0 %v3310_v0  ;;  %2957 = vmatpush3.msra.mxu1 %v3338_v4 }
 0x837   :  { %2948 = vmatpush3.msra.mxu0 %v3411_v37  ;;  %2958 = vmatprep.subr.mxu1 %v3310_v0 }
 0x838   :  { %2949 = vmatprep.subr.mxu0 %v3310_v0  ;;  %2959 = vmatpush3.msra.mxu1 %v3348_v7 }
 0x839   :  { %2950 = vmatpush3.msra.mxu0 %v3417_v38  ;;  %2960 = vmatprep.subr.mxu1 %v3310_v0 }
 0x83a   :  { %2952 = vmatmul.mubr.msk.f32.vlgmr.msra.gmra.mxu0 %vm129_vm2, %v787_v14  ;;  %2965 = vmatprep.subr.mxu0 %v3310_v0 }
 0x83b   :  { %2966 = vmatpush3.msra.mxu0 %v3383_v27  ;;  %2961 = vmatpush3.msra.mxu1 %v3353_v8 }
 0x83c   :  { %2967 = vmatprep.subr.mxu0 %v3310_v0  ;;  %2962 = vmatprep.mubr.msk.f32.mxu1 %vm3311_vm0, %v3310_v0 }
 0x83d   :  { %2968 = vmatpush3.msra.mxu0 %v3385_v28  ;;  %2973 = vmatprep.mubr.msk.f32.mxu0 %vm3311_vm0, %v3310_v0 }
 0x83e   :  { %2969 = vmatprep.subr.mxu0 %v3310_v0  ;;  %2976 = vmatprep.subr.mxu1 %v3310_v0 }
 0x83f   :  { %2970 = vmatpush3.msra.mxu0 %v3389_v29 }
 0x840   :  { %2971 = vmatprep.subr.mxu0 %v3310_v0 }
 0x841   :  { %2972 = vmatpush3.msra.mxu0 %v3393_v30 }
 0x842   :  { %2987 = vmatprep.subr.mxu0 %v3310_v0 }
 0x8f2   :  { %v862_v15 = vpop.f32.mrf.mxu0  ;;  %v963_v16 = vpop.f32.mrf.mxu1 }
 0x8f3   :  { %v867_v17 = vrot.slane %v862_v15, 2  ;;  %v967_v21 = vadd.f32 %v3443_v45, %v963_v16 }
 0x8f4   :  { %v2931_v18 = vpop.f32.mrf.mxu0  ;;  %v2942_v19 = vpop.f32.mrf.mxu1 }
 0x8f5   :  { %v869_v20 = vadd.f32 %v867_v17, %v3375_v13 }
 0x8f7   :  { %3184 = vtanh.f32 %v869_v20  ;;  %v2661_v31 = vmul.f32 -1.442695, %v869_v20 }
 0x8fa   :  { %v1036_v22 = vpop.f32.mrf.mxu0 }
 0x8fb   :  { %v1040_v23 = vadd.f32 %v1036_v22, %v967_v21 }
 0x8fc   :  { %v2953_v24 = vpop.f32.mrf.mxu0 }
 0x8fd   :  { %3186 = vtanh.f32 %v1040_v23  ;;  %v2664_v32 = vmul.f32 -1.442695, %v1040_v23 }
 0x8fe   :  { %3188 = vpow2.f32 %v2661_v31 }
 0x8ff   :  { %3190 = vpow2.f32 %v2664_v32 }
 0x904   :  { %v3185_v25 = vpop.eup %3184 }
 0x905   :  { %882 = vrot.lane.b32.xlu0 %v3185_v25, %s3312_s0 }
 0x90a   :  { %v3187_v26 = vpop.eup %3186 }
 0x90b   :  { %1050 = vrot.lane.b32.xlu1 %v3187_v26, %s3312_s0  ;;  %v3189_v33 = vpop.eup %3188 }
 0x90c   :  { %v873_v35 = vadd.f32 1.0, %v3189_v33  ;;  %v3191_v13 = vpop.eup %3190 }
 0x90d   :  { %v1044_v39 = vadd.f32 1.0, %v3191_v13 }
 0x90e   :  { %3192 = vrcp.f32 %v873_v35 }
 0x90f   :  { %3194 = vrcp.f32 %v1044_v39 }
 0x91b   :  { %v3193_v40 = vpop.eup %3192 }
 0x91c   :  { %v3195_v43 = vpop.eup %3194  ;;  %v880_v48 = vmul.f32 %v3193_v40, %v878_v47 }
 0x91d   :  { %v1048_v51 = vmul.f32 %v3195_v43, %v3506_v62 }
 0x977   :  { %v883_v41 = vpop.permute.xlu0 %882 }
 0x978   :  { %v885_v42 = vmul.f32 %v3193_v40, %v883_v41 }
 0x97a   :  { %887 = vrot.lane.b32.xlu0 %v885_v42, %s3313_s19 }
 0x97d   :  { %v1051_v44 = vpop.permute.xlu1 %1050 }
 0x97e   :  { %v1053_v46 = vmul.f32 %v3195_v43, %v1051_v44 }
 0x980   :  { %1055 = vrot.lane.b32.xlu1 %v1053_v46, %s3313_s19 }
 0x9ec   :  { %v888_v49 = vpop.permute.xlu0 %887 }
 0x9ed   :  { %v3554_v50 = vadd.f32 %v888_v49, %v880_v48 }
 0x9ef   :  { %3196 = vtanh.f32 %v3554_v50  ;;  %v1155_v33 = vrot.slane %v3554_v50, 6 }
 0x9f2   :  { %v1056_v52 = vpop.permute.xlu1 %1055 }
 0x9f3   :  { %v3558_v53 = vadd.f32 %v1056_v52, %v1048_v51 }
 0x9f5   :  { %3198 = vtanh.f32 %v3558_v53 }
 0x9fc   :  { %v3197_v54 = vpop.eup %3196 }
 0x9fd   :  { %893 = vrot.lane.b32.xlu0 %v3197_v54, %s3312_s0 }
 0xa02   :  { %v3199_v55 = vpop.eup %3198 }
 0xa03   :  { %1061 = vrot.lane.b32.xlu1 %v3199_v55, %s3312_s0 }
 0xa6f   :  { %v894_v56 = vpop.permute.xlu0 %893 }
 0xa70   :  { %v896_v57 = vmul.f32 %v3193_v40, %v894_v56 }
 0xa72   :  { %v1071_v58 = vrot.slane %v896_v57, 6 }
 0xa74   :  { %1072 = vrot.lane.b32.xlu0 %v1071_v58, %s3313_s19 }
 0xa75   :  { %v1062_v59 = vpop.permute.xlu1 %1061 }
 0xa76   :  { %v1064_v60 = vmul.f32 %v3195_v43, %v1062_v59 }
 0xa78   :  { %1066 = vrot.lane.b32.xlu1 %v1064_v60, %s3313_s19 }
 0xae6   :  { %v1073_v61 = vpop.permute.xlu0 %1072 }
 0xae7   :  { %2963 = vmatmul.mubr.msk.f32.vlgmr.msra.gmra.mxu1 %vm129_vm2, %v1073_v61  ;;  %2974 = vmatmul.mubr.msk.f32.vlgmr.msra.gmra.mxu0 %vm129_vm2, %v1073_v61 }
 0xae8   :  { %2977 = vmatpush3.msra.mxu1 %v3401_v34  ;;  %2984 = vmatprep.mubr.msk.f32.mxu1 %vm3311_vm0, %v3310_v0 }
 0xae9   :  { %2978 = vmatprep.subr.mxu1 %v3310_v0  ;;  %2988 = vmatpush3.msra.mxu0 %v3335_v2 }
 0xaea   :  { %2979 = vmatpush3.msra.mxu1 %v3405_v36  ;;  %v1067_v62 = vpop.permute.xlu1 %1066  ;;  %2989 = vmatprep.subr.mxu0 %v3310_v0 }
 0xaeb   :  { %1069 = vst.msk [vmem:[#allocation2 + $0x4] sm:$0x3] %vm508_vm3, %v1067_v62  ;;  %2980 = vmatprep.subr.mxu1 %v3310_v0  ;;  %2990 = vmatpush3.msra.mxu0 %v3338_v4 }
 0xaec   :  { %2981 = vmatpush3.msra.mxu1 %v3411_v37  ;;  %2991 = vmatprep.subr.mxu0 %v3310_v0 }
 0xaed   :  { %2982 = vmatprep.subr.mxu1 %v3310_v0  ;;  %2992 = vmatpush3.msra.mxu0 %v3348_v7 }
 0xaee   :  { %2983 = vmatpush3.msra.mxu1 %v3417_v38  ;;  %2993 = vmatprep.subr.mxu0 %v3310_v0 }
 0xaef   :  { %2985 = vmatmul.mubr.msk.f32.vlgmr.msra.gmra.mxu1 %vm129_vm2, %v1067_v62  ;;  %2998 = vmatprep.subr.mxu1 %v3310_v0 }
 0xaf0   :  { %2999 = vmatpush3.msra.mxu1 %v3383_v27  ;;  %2994 = vmatpush3.msra.mxu0 %v3353_v8 }
 0xaf1   :  { %3000 = vmatprep.subr.mxu1 %v3310_v0  ;;  %2995 = vmatprep.mubr.msk.f32.mxu0 %vm3311_vm0, %v3310_v0 }
 0xaf2   :  { %3001 = vmatpush3.msra.mxu1 %v3385_v28  ;;  %3009 = vmatprep.subr.mxu0 %v3310_v0 }
 0xaf3   :  { %3002 = vmatprep.subr.mxu1 %v3310_v0  ;;  %3006 = vmatprep.mubr.msk.f32.mxu1 %vm3311_vm0, %v3310_v0 }
 0xaf4   :  { %3003 = vmatpush3.msra.mxu1 %v3389_v29 }
 0xaf5   :  { %3004 = vmatprep.subr.mxu1 %v3310_v0 }
 0xaf6   :  { %3005 = vmatpush3.msra.mxu1 %v3393_v30 }
 0xaf7   :  { %3020 = vmatprep.subr.mxu1 %v3310_v0 }
 0xba7   :  { %v1142_v63 = vpop.f32.mrf.mxu1  ;;  %v1240_v1 = vpop.f32.mrf.mxu0 }
 0xba8   :  { %v1146_v3 = vadd.f32 %v1142_v63, %v3373_v11  ;;  %v1244_v9 = vadd.f32 %v3443_v45, %v1240_v1 }
 0xba9   :  { %v2964_v5 = vpop.f32.mrf.mxu1  ;;  %v2975_v6 = vpop.f32.mrf.mxu0 }
 0xbaa   :  { %3200 = vtanh.f32 %v1146_v3  ;;  %v2666_v17 = vmul.f32 -1.442695, %v1146_v3 }
 0xbaf   :  { %v1313_v10 = vpop.f32.mrf.mxu1 }
 0xbb0   :  { %v1317_v12 = vadd.f32 %v1313_v10, %v1244_v9 }
 0xbb1   :  { %v2986_v14 = vpop.f32.mrf.mxu1 }
 0xbb2   :  { %3202 = vtanh.f32 %v1317_v12  ;;  %v2669_v18 = vmul.f32 -1.442695, %v1317_v12 }
 0xbb3   :  { %3204 = vpow2.f32 %v2666_v17 }
 0xbb4   :  { %3206 = vpow2.f32 %v2669_v18 }
 0xbb7   :  { %v3201_v15 = vpop.eup %3200 }
 0xbb8   :  { %1159 = vrot.lane.b32.xlu0 %v3201_v15, %s3312_s0 }
 0xbbf   :  { %v3203_v16 = vpop.eup %3202 }
 0xbc0   :  { %1327 = vrot.lane.b32.xlu1 %v3203_v16, %s3312_s0  ;;  %v3205_v19 = vpop.eup %3204 }
 0xbc1   :  { %v1150_v20 = vadd.f32 1.0, %v3205_v19  ;;  %v3207_v21 = vpop.eup %3206 }
 0xbc2   :  { %v1321_v22 = vadd.f32 1.0, %v3207_v21 }
 0xbc3   :  { %3208 = vrcp.f32 %v1150_v20 }
 0xbc4   :  { %3210 = vrcp.f32 %v1321_v22 }
 0xbd0   :  { %v3209_v23 = vpop.eup %3208 }
 0xbd1   :  { %v3211_v26 = vpop.eup %3210  ;;  %v1157_v35 = vmul.f32 %v3209_v23, %v1155_v33 }
 0xbd2   :  { %v1325_v40 = vmul.f32 %v3211_v26, %v3558_v53 }
 0xc2a   :  { %v1160_v24 = vpop.permute.xlu0 %1159 }
 0xc2b   :  { %v1162_v25 = vmul.f32 %v3209_v23, %v1160_v24 }
 0xc2d   :  { %1164 = vrot.lane.b32.xlu0 %v1162_v25, %s3313_s19 }
 0xc32   :  { %v1328_v31 = vpop.permute.xlu1 %1327 }
 0xc33   :  { %v1330_v32 = vmul.f32 %v3211_v26, %v1328_v31 }
 0xc35   :  { %1332 = vrot.lane.b32.xlu1 %v1330_v32, %s3313_s19 }
 0xc9f   :  { %v1165_v13 = vpop.permute.xlu0 %1164 }
 0xca0   :  { %v3606_v39 = vadd.f32 %v1165_v13, %v1157_v35  ;;  %v3272_v35 = vld [vmem:[#allocation3 + $0x28] sm:$0xff] }
 0xca2   :  { %3212 = vtanh.f32 %v3606_v39  ;;  %v1434_v15 = vrot.slane %v3606_v39, 6  ;;  %v3273_v39 = vld [vmem:[#allocation3 + $0x20] sm:$0xff] }
 0xca7   :  { %v1333_v41 = vpop.permute.xlu1 %1332 }
 0xca8   :  { %v3610_v42 = vadd.f32 %v1333_v41, %v1325_v40 }
 0xcaa   :  { %3214 = vtanh.f32 %v3610_v42 }
 0xcaf   :  { %v3213_v43 = vpop.eup %3212 }
 0xcb0   :  { %1170 = vrot.lane.b32.xlu0 %v3213_v43, %s3312_s0 }
 0xcb7   :  { %v3215_v44 = vpop.eup %3214 }
 0xcb8   :  { %1338 = vrot.lane.b32.xlu1 %v3215_v44, %s3312_s0 }
 0xd22   :  { %v1171_v46 = vpop.permute.xlu0 %1170 }
 0xd23   :  { %v1173_v47 = vmul.f32 %v3209_v23, %v1171_v46 }
 0xd25   :  { %1348 = vrot.lane.b32.xlu0 %v1173_v47, %s3313_s19 }
 0xd2a   :  { %v1339_v48 = vpop.permute.xlu1 %1338 }
 0xd2b   :  { %v1341_v49 = vmul.f32 %v3211_v26, %v1339_v48 }
 0xd2d   :  { %1343 = vrot.lane.b32.xlu1 %v1341_v49, %s3313_s19 }
 0xd97   :  { %v1349_v50 = vpop.permute.xlu0 %1348 }
 0xd98   :  { %2996 = vmatmul.mubr.msk.f32.vlgmr.msra.gmra.mxu0 %vm129_vm2, %v1349_v50  ;;  %3007 = vmatmul.mubr.msk.f32.vlgmr.msra.gmra.mxu1 %vm129_vm2, %v1349_v50 }
 0xd99   :  { %3010 = vmatpush3.msra.mxu0 %v3401_v34  ;;  %3017 = vmatprep.mubr.msk.f32.mxu0 %vm3311_vm0, %v3310_v0 }
 0xd9a   :  { %3011 = vmatprep.subr.mxu0 %v3310_v0  ;;  %3021 = vmatpush3.msra.mxu1 %v3335_v2 }
 0xd9b   :  { %3012 = vmatpush3.msra.mxu0 %v3405_v36  ;;  %3022 = vmatprep.subr.mxu1 %v3310_v0 }
 0xd9c   :  { %3013 = vmatprep.subr.mxu0 %v3310_v0  ;;  %3023 = vmatpush3.msra.mxu1 %v3338_v4 }
 0xd9d   :  { %3014 = vmatpush3.msra.mxu0 %v3411_v37  ;;  %3024 = vmatprep.subr.mxu1 %v3310_v0 }
 0xd9e   :  { %3015 = vmatprep.subr.mxu0 %v3310_v0  ;;  %3025 = vmatpush3.msra.mxu1 %v3348_v7 }
 0xd9f   :  { %3016 = vmatpush3.msra.mxu0 %v3417_v38  ;;  %v1344_v51 = vpop.permute.xlu1 %1343  ;;  %3026 = vmatprep.subr.mxu1 %v3310_v0 }
 0xda0   :  { %1346 = vst.msk [vmem:[#allocation2 + $0x6] sm:$0x3] %vm508_vm3, %v1344_v51  ;;  %3018 = vmatmul.mubr.msk.f32.vlgmr.msra.gmra.mxu0 %vm129_vm2, %v1344_v51  ;;  %3031 = vmatprep.subr.mxu0 %v3310_v0 }
 0xda1   :  { %3032 = vmatpush3.msra.mxu0 %v3383_v27  ;;  %3027 = vmatpush3.msra.mxu1 %v3353_v8 }
 0xda2   :  { %3033 = vmatprep.subr.mxu0 %v3310_v0  ;;  %3028 = vmatprep.mubr.msk.f32.mxu1 %vm3311_vm0, %v3310_v0 }
 0xda3   :  { %3034 = vmatpush3.msra.mxu0 %v3385_v28  ;;  %3039 = vmatprep.mubr.msk.f32.mxu0 %vm3311_vm0, %v3310_v0 }
 0xda4   :  { %3035 = vmatprep.subr.mxu0 %v3310_v0  ;;  %3042 = vmatprep.subr.mxu1 %v3310_v0 }
 0xda5   :  { %3036 = vmatpush3.msra.mxu0 %v3389_v29 }
 0xda6   :  { %3037 = vmatprep.subr.mxu0 %v3310_v0 }
 0xda7   :  { %3038 = vmatpush3.msra.mxu0 %v3393_v30 }
 0xda8   :  { %3053 = vmatprep.subr.mxu0 %v3310_v0 }
 0xe58   :  { %v1418_v2 = vpop.f32.mrf.mxu0  ;;  %v1519_v4 = vpop.f32.mrf.mxu1 }
 0xe59   :  { %v1423_v7 = vrot.slane %v1418_v2, 6  ;;  %v1523_v54 = vadd.f32 %v3443_v45, %v1519_v4 }
 0xe5a   :  { %v2997_v8 = vpop.f32.mrf.mxu0  ;;  %v3008_v52 = vpop.f32.mrf.mxu1 }
 0xe5b   :  { %v1425_v53 = vadd.f32 %v1423_v7, %v3373_v11 }
 0xe5d   :  { %3216 = vtanh.f32 %v1425_v53  ;;  %v2671_v60 = vmul.f32 -1.442695, %v1425_v53 }
 0xe60   :  { %v1592_v55 = vpop.f32.mrf.mxu0 }
 0xe61   :  { %v1596_v56 = vadd.f32 %v1592_v55, %v1523_v54 }
 0xe62   :  { %v3019_v57 = vpop.f32.mrf.mxu0 }
 0xe63   :  { %3218 = vtanh.f32 %v1596_v56  ;;  %v2674_v61 = vmul.f32 -1.442695, %v1596_v56 }
 0xe64   :  { %3220 = vpow2.f32 %v2671_v60 }
 0xe65   :  { %3222 = vpow2.f32 %v2674_v61 }
 0xe6a   :  { %v3217_v58 = vpop.eup %3216 }
 0xe6b   :  { %1438 = vrot.lane.b32.xlu0 %v3217_v58, %s3312_s0 }
 0xe70   :  { %v3219_v59 = vpop.eup %3218 }
 0xe71   :  { %1606 = vrot.lane.b32.xlu1 %v3219_v59, %s3312_s0  ;;  %v3221_v62 = vpop.eup %3220 }
 0xe72   :  { %v1429_v63 = vadd.f32 1.0, %v3221_v62  ;;  %v3223_v1 = vpop.eup %3222 }
 0xe73   :  { %v1600_v3 = vadd.f32 1.0, %v3223_v1 }
 0xe74   :  { %3224 = vrcp.f32 %v1429_v63 }
 0xe75   :  { %3226 = vrcp.f32 %v1600_v3 }
 0xe81   :  { %v3225_v5 = vpop.eup %3224 }
 0xe82   :  { %v3227_v10 = vpop.eup %3226  ;;  %v1436_v16 = vmul.f32 %v3225_v5, %v1434_v15 }
 0xe83   :  { %v1604_v19 = vmul.f32 %v3227_v10, %v3610_v42 }
 0xedd   :  { %v1439_v6 = vpop.permute.xlu0 %1438 }
 0xede   :  { %v1441_v9 = vmul.f32 %v3225_v5, %v1439_v6 }
 0xee0   :  { %1443 = vrot.lane.b32.xlu0 %v1441_v9, %s3313_s19 }
 0xee3   :  { %v1607_v12 = vpop.permute.xlu1 %1606 }
 0xee4   :  { %v1609_v14 = vmul.f32 %v3227_v10, %v1607_v12  ;;  %v3277_v12 = vld [vmem:[#allocation3 + $0x50] sm:$0xff] }
 0xee6   :  { %1611 = vrot.lane.b32.xlu1 %v1609_v14, %s3313_s19  ;;  %v3278_v14 = vld [vmem:[#allocation3 + $0x68] sm:$0xff] }
 0xf52   :  { %v1444_v17 = vpop.permute.xlu0 %1443 }
 0xf53   :  { %v3658_v18 = vadd.f32 %v1444_v17, %v1436_v16  ;;  %v3279_v16 = vld [vmem:[#allocation3 + $0x48] sm:$0xff]  ;;  %v3280_v17 = vld [vmem:[#allocation3 + $0x60] sm:$0xff] }
 0xf55   :  { %3228 = vtanh.f32 %v3658_v18  ;;  %v1714_v54 = vrot.slane %v3658_v18, 6  ;;  %v3281_v18 = vld [vmem:[#allocation3 + $0x40] sm:$0xff] }
 0xf58   :  { %v1612_v20 = vpop.permute.xlu1 %1611 }
 0xf59   :  { %v3662_v21 = vadd.f32 %v1612_v20, %v1604_v19  ;;  %v3282_v19 = vld [vmem:[#allocation3 + $0x58] sm:$0xff] }
 0xf5a   :  { %v3283_v20 = vld [vmem:[#allocation3 + $0x38] sm:$0xff] }
 0xf5b   :  { %3230 = vtanh.f32 %v3662_v21 }
 0xf62   :  { %v3229_v22 = vpop.eup %3228 }
 0xf63   :  { %1449 = vrot.lane.b32.xlu0 %v3229_v22, %s3312_s0 }
 0xf68   :  { %v3231_v23 = vpop.eup %3230 }
 0xf69   :  { %1617 = vrot.lane.b32.xlu1 %v3231_v23, %s3312_s0 }
 0xfd5   :  { %v1450_v24 = vpop.permute.xlu0 %1449 }
 0xfd6   :  { %v1452_v25 = vmul.f32 %v3225_v5, %v1450_v24 }
 0xfd8   :  { %v1627_v26 = vrot.slane %v1452_v25, 2 }
 0xfda   :  { %1628 = vrot.lane.b32.xlu0 %v1627_v26, %s3313_s19 }
 0xfdb   :  { %v1618_v31 = vpop.permute.xlu1 %1617 }
 0xfdc   :  { %v1620_v32 = vmul.f32 %v3227_v10, %v1618_v31  ;;  %v3276_v10 = vld [vmem:[#allocation3 + $0x70] sm:$0xff]  ;;  %v3284_v31 = vld [vmem:[#allocation3 + $0x78] ss:$0 sm:$0xff] }
 0xfde   :  { %1622 = vrot.lane.b32.xlu1 %v1620_v32, %s3313_s19 }
0x104c   :  { %v1629_v33 = vpop.permute.xlu0 %1628 }
0x104d   :  { %3029 = vmatmul.mubr.msk.f32.vlgmr.msra.gmra.mxu1 %vm129_vm2, %v1629_v33  ;;  %3040 = vmatmul.mubr.msk.f32.vlgmr.msra.gmra.mxu0 %vm129_vm2, %v1629_v33 }
0x104e   :  { %3043 = vmatpush3.msra.mxu1 %v3401_v34  ;;  %3050 = vmatprep.mubr.msk.f32.mxu1 %vm3311_vm0, %v3310_v0  ;;  %v3274_v34 = vld [vmem:[#allocation3 + $0x18] sm:$0xff] }
0x104f   :  { %3044 = vmatprep.subr.mxu1 %v3310_v0  ;;  %3054 = vmatpush3.msra.mxu0 %v3272_v35 }
0x1050   :  { %3045 = vmatpush3.msra.mxu1 %v3405_v36  ;;  %v1623_v13 = vpop.permute.xlu1 %1622  ;;  %3055 = vmatprep.subr.mxu0 %v3310_v0  ;;  %v3275_v36 = vld [vmem:[#allocation3 + $0x10] sm:$0xff] }
0x1051   :  { %1625 = vst.msk [vmem:[#allocation2 + $0x8] sm:$0x3] %vm508_vm3, %v1623_v13  ;;  %3046 = vmatprep.subr.mxu1 %v3310_v0  ;;  %3056 = vmatpush3.msra.mxu0 %v3273_v39 }
0x1052   :  { %3047 = vmatpush3.msra.mxu1 %v3411_v37  ;;  %3057 = vmatprep.subr.mxu0 %v3310_v0 }
0x1053   :  { %3048 = vmatprep.subr.mxu1 %v3310_v0  ;;  %3058 = vmatpush3.msra.mxu0 %v3274_v34 }
0x1054   :  { %3049 = vmatpush3.msra.mxu1 %v3417_v38  ;;  %3059 = vmatprep.subr.mxu0 %v3310_v0 }
0x1055   :  { %3051 = vmatmul.mubr.msk.f32.vlgmr.msra.gmra.mxu1 %vm129_vm2, %v1623_v13  ;;  %3064 = vmatprep.subr.mxu1 %v3310_v0 }
0x1056   :  { %3065 = vmatpush3.msra.mxu1 %v3383_v27  ;;  %3060 = vmatpush3.msra.mxu0 %v3275_v36 }
0x1057   :  { %3066 = vmatprep.subr.mxu1 %v3310_v0  ;;  %3061 = vmatprep.mubr.msk.f32.mxu0 %vm3311_vm0, %v3310_v0 }
0x1058   :  { %3067 = vmatpush3.msra.mxu1 %v3385_v28  ;;  %3075 = vmatprep.subr.mxu0 %v3310_v0 }
0x1059   :  { %3068 = vmatprep.subr.mxu1 %v3310_v0  ;;  %3072 = vmatprep.mubr.msk.f32.mxu1 %vm3311_vm0, %v3310_v0 }
0x105a   :  { %3069 = vmatpush3.msra.mxu1 %v3389_v29 }
0x105b   :  { %3070 = vmatprep.subr.mxu1 %v3310_v0 }
0x105c   :  { %3071 = vmatpush3.msra.mxu1 %v3393_v30 }
0x105d   :  { %3086 = vmatprep.subr.mxu1 %v3310_v0 }
0x110d   :  { %v1698_v27 = vpop.f32.mrf.mxu1  ;;  %v1799_v37 = vpop.f32.mrf.mxu0 }
0x110e   :  { %v1703_v38 = vrot.slane %v1698_v27, 4  ;;  %v1803_v42 = vadd.f32 %v3443_v45, %v1799_v37 }
0x110f   :  { %v3030_v40 = vpop.f32.mrf.mxu1  ;;  %v3041_v28 = vpop.f32.mrf.mxu0 }
0x1110   :  { %v1705_v41 = vadd.f32 %v1703_v38, %v3373_v11 }
0x1112   :  { %3232 = vtanh.f32 %v1705_v41  ;;  %v2676_v47 = vmul.f32 -1.442695, %v1705_v41 }
0x1115   :  { %v1872_v43 = vpop.f32.mrf.mxu1 }
0x1116   :  { %v1876_v44 = vadd.f32 %v1872_v43, %v1803_v42 }
0x1117   :  { %v3052_v46 = vpop.f32.mrf.mxu1 }
0x1118   :  { %3234 = vtanh.f32 %v1876_v44  ;;  %v2679_v48 = vmul.f32 -1.442695, %v1876_v44 }
0x1119   :  { %3236 = vpow2.f32 %v2676_v47 }
0x111a   :  { %3238 = vpow2.f32 %v2679_v48 }
0x111f   :  { %v3233_v29 = vpop.eup %3232 }
0x1120   :  { %1718 = vrot.lane.b32.xlu0 %v3233_v29, %s3312_s0 }
0x1125   :  { %v3235_v30 = vpop.eup %3234 }
0x1126   :  { %1886 = vrot.lane.b32.xlu1 %v3235_v30, %s3312_s0  ;;  %v3237_v49 = vpop.eup %3236 }
0x1127   :  { %v1709_v50 = vadd.f32 1.0, %v3237_v49  ;;  %v3239_v51 = vpop.eup %3238 }
0x1128   :  { %v1880_v2 = vadd.f32 1.0, %v3239_v51 }
0x1129   :  { %3240 = vrcp.f32 %v1709_v50 }
0x112a   :  { %3242 = vrcp.f32 %v1880_v2 }
0x1136   :  { %v3241_v45 = vpop.eup %3240 }
0x1137   :  { %v3243_v8 = vpop.eup %3242  ;;  %v1716_v55 = vmul.f32 %v3241_v45, %v1714_v54  ;;  %v2365_v54 = vld [vmem:[#allocation2] sm:$0xff] }
0x1138   :  { %v1884_v58 = vmul.f32 %v3243_v8, %v3662_v21 }
0x1192   :  { %v1719_v4 = vpop.permute.xlu0 %1718 }
0x1193   :  { %v1721_v7 = vmul.f32 %v3241_v45, %v1719_v4 }
0x1195   :  { %1723 = vrot.lane.b32.xlu0 %v1721_v7, %s3313_s19 }
0x1198   :  { %v1887_v52 = vpop.permute.xlu1 %1886 }
0x1199   :  { %v1889_v53 = vmul.f32 %v3243_v8, %v1887_v52 }
0x119b   :  { %1891 = vrot.lane.b32.xlu1 %v1889_v53, %s3313_s19 }
0x1207   :  { %v1724_v56 = vpop.permute.xlu0 %1723 }
0x1208   :  { %v3706_v57 = vadd.f32 %v1724_v56, %v1716_v55 }
0x120a   :  { %3244 = vtanh.f32 %v3706_v57  ;;  %v1994_v46 = vrot.slane %v3706_v57, 6 }
0x120d   :  { %v1892_v59 = vpop.permute.xlu1 %1891 }
0x120e   :  { %v3710_v60 = vadd.f32 %v1892_v59, %v1884_v58 }
0x1210   :  { %3246 = vtanh.f32 %v3710_v60 }
0x1217   :  { %v3245_v61 = vpop.eup %3244 }
0x1218   :  { %1729 = vrot.lane.b32.xlu0 %v3245_v61, %s3312_s0 }
0x121d   :  { %v3247_v62 = vpop.eup %3246 }
0x121e   :  { %1897 = vrot.lane.b32.xlu1 %v3247_v62, %s3312_s0 }
0x128a   :  { %v1730_v63 = vpop.permute.xlu0 %1729 }
0x128b   :  { %v1732_v1 = vmul.f32 %v3241_v45, %v1730_v63 }
0x128d   :  { %v1907_v3 = vrot.slane %v1732_v1, 4 }
0x128f   :  { %1908 = vrot.lane.b32.xlu0 %v1907_v3, %s3313_s19 }
0x1290   :  { %v1898_v5 = vpop.permute.xlu1 %1897 }
0x1291   :  { %v1900_v6 = vmul.f32 %v3243_v8, %v1898_v5 }
0x1293   :  { %1902 = vrot.lane.b32.xlu1 %v1900_v6, %s3313_s19 }
0x1301   :  { %v1909_v9 = vpop.permute.xlu0 %1908 }
0x1302   :  { %3062 = vmatmul.mubr.msk.f32.vlgmr.msra.gmra.mxu0 %vm129_vm2, %v1909_v9  ;;  %3073 = vmatmul.mubr.msk.f32.vlgmr.msra.gmra.mxu1 %vm129_vm2, %v1909_v9 }
0x1303   :  { %3076 = vmatpush3.msra.mxu0 %v3276_v10  ;;  %3083 = vmatprep.mubr.msk.f32.mxu0 %vm3311_vm0, %v3310_v0 }
0x1304   :  { %3077 = vmatprep.subr.mxu0 %v3310_v0  ;;  %3087 = vmatpush3.msra.mxu1 %v3277_v12 }
0x1305   :  { %3078 = vmatpush3.msra.mxu0 %v3278_v14  ;;  %v1903_v15 = vpop.permute.xlu1 %1902  ;;  %3088 = vmatprep.subr.mxu1 %v3310_v0 }
0x1306   :  { %1905 = vst.msk [vmem:[#allocation2 + $0xa] sm:$0x3] %vm508_vm3, %v1903_v15  ;;  %3079 = vmatprep.subr.mxu0 %v3310_v0  ;;  %3089 = vmatpush3.msra.mxu1 %v3279_v16  ;;  %v2370_v16 = vld [vmem:[#allocation3 + $0x98] sm:$0xff] }
0x1307   :  { %3080 = vmatpush3.msra.mxu0 %v3280_v17  ;;  %3090 = vmatprep.subr.mxu1 %v3310_v0 }
0x1308   :  { %3081 = vmatprep.subr.mxu0 %v3310_v0  ;;  %3091 = vmatpush3.msra.mxu1 %v3281_v18  ;;  %v2368_v18 = vld [vmem:[#allocation3 + $0x88] sm:$0xff] }
0x1309   :  { %3082 = vmatpush3.msra.mxu0 %v3282_v19  ;;  %3092 = vmatprep.subr.mxu1 %v3310_v0 }
0x130a   :  { %3084 = vmatmul.mubr.msk.f32.vlgmr.msra.gmra.mxu0 %vm129_vm2, %v1903_v15  ;;  %3097 = vmatprep.subr.mxu0 %v3310_v0 }
0x130b   :  { %3098 = vmatpush3.msra.mxu0 %v3276_v10  ;;  %3093 = vmatpush3.msra.mxu1 %v3283_v20 }
0x130c   :  { %3099 = vmatprep.subr.mxu0 %v3310_v0  ;;  %3094 = vmatprep.mubr.msk.f32.mxu1 %vm3311_vm0, %v3310_v0 }
0x130d   :  { %3100 = vmatpush3.msra.mxu0 %v3278_v14  ;;  %3105 = vmatprep.mubr.msk.f32.mxu0 %vm3311_vm0, %v3310_v0 }
0x130e   :  { %3101 = vmatprep.subr.mxu0 %v3310_v0  ;;  %3108 = vmatprep.subr.mxu1 %v2370_v16 }
0x130f   :  { %3102 = vmatpush3.msra.mxu0 %v3280_v17  ;;  %v2369_v17 = vld [vmem:[#allocation3 + $0x90] sm:$0xff] }
0x1310   :  { %3103 = vmatprep.subr.mxu0 %v3310_v0 }
0x1311   :  { %3104 = vmatpush3.msra.mxu0 %v3282_v19  ;;  %v2367_v19 = vld [vmem:[#allocation3 + $0x80] sm:$0xff] }
0x13c2   :  { %v1978_v21 = vpop.f32.mrf.mxu0  ;;  %v2079_v22 = vpop.f32.mrf.mxu1 }
0x13c3   :  { %v1983_v23 = vrot.slane %v1978_v21, 2  ;;  %v2083_v32 = vadd.f32 %v3284_v31, %v2079_v22 }
0x13c4   :  { %v3063_v24 = vpop.f32.mrf.mxu0  ;;  %v3074_v25 = vpop.f32.mrf.mxu1 }
0x13c5   :  { %v1985_v26 = vadd.f32 %v1983_v23, %v3373_v11  ;;  %v2462_v24 = vld [vmem:[#allocation3 + $0xc0] sm:$0xff]  ;;  %v2461_v25 = vld [vmem:[#allocation3 + $0xb8] sm:$0xff] }
0x13c6   :  { %3119 = vmatprep.subr.mxu0 %v2462_v24 }
0x13c7   :  { %3248 = vtanh.f32 %v1985_v26  ;;  %v2681_v0 = vmul.f32 -1.442695, %v1985_v26  ;;  %v2460_v26 = vld [vmem:[#allocation3 + $0xb0] sm:$0xff] }
0x13ca   :  { %v2152_v33 = vpop.f32.mrf.mxu0 }
0x13cb   :  { %v2156_v35 = vadd.f32 %v2152_v33, %v2083_v32  ;;  %v2688_v32 = vld [vmem:[#allocation3 + $0xa0] ss:$0 sm:$0xff] }
0x13cc   :  { %v3085_v13 = vpop.f32.mrf.mxu0 }
0x13cd   :  { %3250 = vtanh.f32 %v2156_v35  ;;  %v2684_v36 = vmul.f32 -1.442695, %v2156_v35 }
0x13ce   :  { %3252 = vpow2.f32 %v2681_v0 }
0x13cf   :  { %3254 = vpow2.f32 %v2684_v36  ;;  %v2552_v36 = vld [vmem:[#allocation3 + $0xd8] sm:$0xff] }
0x13d4   :  { %v3249_v39 = vpop.eup %3248 }
0x13d5   :  { %1998 = vrot.lane.b32.xlu0 %v3249_v39, %s3312_s0 }
0x13da   :  { %v3251_v34 = vpop.eup %3250 }
0x13db   :  { %2166 = vrot.lane.b32.xlu1 %v3251_v34, %s3312_s0  ;;  %v3253_v27 = vpop.eup %3252 }
0x13dc   :  { %v1989_v37 = vadd.f32 1.0, %v3253_v27  ;;  %v3255_v11 = vpop.eup %3254  ;;  %v2551_v27 = vld [vmem:[#allocation3 + $0xd0] sm:$0xff] }
0x13dd   :  { %v2160_v38 = vadd.f32 1.0, %v3255_v11 }
0x13de   :  { %3256 = vrcp.f32 %v1989_v37  ;;  %v2691_v37 = vld [vmem:[#allocation3 + $0xc8] ss:$0 sm:$0xff] }
0x13df   :  { %3258 = vrcp.f32 %v2160_v38 }
0x13eb   :  { %v3257_v40 = vpop.eup %3256 }
0x13ec   :  { %v3259_v42 = vpop.eup %3258  ;;  %v1996_v29 = vmul.f32 %v3257_v40, %v1994_v46 }
0x13ed   :  { %v2164_v48 = vmul.f32 %v3259_v42, %v3710_v60 }
0x1447   :  { %v1999_v28 = vpop.permute.xlu0 %1998 }
0x1448   :  { %v2001_v41 = vmul.f32 %v3257_v40, %v1999_v28 }
0x144a   :  { %2003 = vrot.lane.b32.xlu0 %v2001_v41, %s3313_s19 }
0x144d   :  { %v2167_v43 = vpop.permute.xlu1 %2166 }
0x144e   :  { %v2169_v44 = vmul.f32 %v3259_v42, %v2167_v43  ;;  %v2694_v43 = vld [vmem:[#allocation3 + $0xe0] ss:$0 sm:$0xff] }
0x1450   :  { %2171 = vrot.lane.b32.xlu1 %v2169_v44, %s3313_s19 }
0x14bc   :  { %v2004_v30 = vpop.permute.xlu0 %2003 }
0x14bd   :  { %v2006_v47 = vadd.f32 %v2004_v30, %v1996_v29 }
0x14bf   :  { %3260 = vtanh.f32 %v2006_v47 }
0x14c2   :  { %v2172_v49 = vpop.permute.xlu1 %2171 }
0x14c3   :  { %v2174_v50 = vadd.f32 %v2172_v49, %v2164_v48 }
0x14c5   :  { %3262 = vtanh.f32 %v2174_v50 }
0x14cc   :  { %v3261_v51 = vpop.eup %3260 }
0x14cd   :  { %2009 = vrot.lane.b32.xlu0 %v3261_v51, %s3312_s0 }
0x14d2   :  { %v3263_v2 = vpop.eup %3262 }
0x14d3   :  { %2177 = vrot.lane.b32.xlu1 %v3263_v2, %s3312_s0 }
0x153f   :  { %v2010_v45 = vpop.permute.xlu0 %2009 }
0x1540   :  { %v2012_v4 = vmul.f32 %v3257_v40, %v2010_v45 }
0x1542   :  { %v2187_v7 = vrot.slane %v2012_v4, 6 }
0x1544   :  { %2188 = vrot.lane.b32.xlu0 %v2187_v7, %s3313_s19 }
0x1545   :  { %v2178_v8 = vpop.permute.xlu1 %2177 }
0x1546   :  { %v2180_v52 = vmul.f32 %v3259_v42, %v2178_v8 }
0x1548   :  { %2182 = vrot.lane.b32.xlu1 %v2180_v52, %s3313_s19 }
0x15b6   :  { %v2189_v53 = vpop.permute.xlu0 %2188 }
0x15b7   :  { %3095 = vmatmul.mubr.msk.f32.vlgmr.msra.gmra.mxu1 %vm129_vm2, %v2189_v53 }
0x15b8   :  { %3116 = vmatprep.mubr.msk.f32.mxu1 %vm129_vm2, %v2365_v54  ;;  %3109 = vmatpush3.msra.mxu1 %v2370_v16 }
0x15b9   :  { %3110 = vmatprep.subr.mxu1 %v2369_v17 }
0x15ba   :  { %v2183_v55 = vpop.permute.xlu1 %2182  ;;  %3111 = vmatpush3.msra.mxu1 %v2369_v17 }
0x15bb   :  { %2185 = vst.msk [vmem:[#allocation2 + $0xc] sm:$0x3] %vm508_vm3, %v2183_v55  ;;  %3106 = vmatmul.mubr.msk.f32.vlgmr.msra.gmra.mxu0 %vm129_vm2, %v2183_v55  ;;  %3112 = vmatprep.subr.mxu1 %v2368_v18 }
0x15bc   :  { %3113 = vmatpush3.msra.mxu1 %v2368_v18  ;;  %3120 = vmatpush3.msra.mxu0 %v2462_v24 }
0x15bd   :  { %3114 = vmatprep.subr.mxu1 %v2367_v19  ;;  %3121 = vmatprep.subr.mxu0 %v2461_v25 }
0x15be   :  { %3115 = vmatpush3.msra.mxu1 %v2367_v19  ;;  %3122 = vmatpush3.msra.mxu0 %v2461_v25 }
0x15bf   :  { %3123 = vmatprep.subr.mxu0 %v2460_v26  ;;  %3130 = vmatprep.subr.mxu1 %v2552_v36 }
0x15c0   :  { %3124 = vmatpush3.msra.mxu0 %v2460_v26 }
0x1677   :  { %v2258_v56 = vpop.f32.mrf.mxu1 }
0x1678   :  { %v2262_v57 = vadd.f32 %v3284_v31, %v2258_v56  ;;  %v2459_v31 = vld [vmem:[#allocation3 + $0xa8] sm:$0xff] }
0x1679   :  { %v3096_v58 = vpop.f32.mrf.mxu1  ;;  %3125 = vmatprep.subr.mxu0 %v2459_v31 }
0x167a   :  { %3126 = vmatpush3.msra.mxu0 %v2459_v31 }
0x167b   :  { %v2331_v59 = vpop.f32.mrf.mxu0 }
0x167c   :  { %v2335_v60 = vadd.f32 %v2331_v59, %v2262_v57 }
0x167d   :  { %v3107_v61 = vpop.f32.mrf.mxu0 }
0x167e   :  { %3264 = vtanh.f32 %v2335_v60  ;;  %v2687_v63 = vmul.f32 -1.442695, %v2335_v60 }
0x1680   :  { %3266 = vpow2.f32 %v2687_v63 }
0x168b   :  { %v3265_v62 = vpop.eup %3264 }
0x168c   :  { %2345 = vrot.lane.b32.xlu0 %v3265_v62, %s3312_s0 }
0x168d   :  { %v3267_v1 = vpop.eup %3266 }
0x168e   :  { %v2339_v3 = vadd.f32 1.0, %v3267_v1 }
0x1690   :  { %3268 = vrcp.f32 %v2339_v3 }
0x169d   :  { %v3269_v5 = vpop.eup %3268 }
0x169e   :  { %v2343_v10 = vmul.f32 %v3269_v5, %v2174_v50 }
0x16fe   :  { %v2346_v6 = vpop.permute.xlu0 %2345 }
0x16ff   :  { %v2348_v9 = vmul.f32 %v3269_v5, %v2346_v6 }
0x1701   :  { %2350 = vrot.lane.b32.xlu1 %v2348_v9, %s3313_s19 }
0x1773   :  { %v2351_v12 = vpop.permute.xlu1 %2350 }
0x1774   :  { %v2353_v14 = vadd.f32 %v2351_v12, %v2343_v10 }
0x1776   :  { %3270 = vtanh.f32 %v2353_v14 }
0x1783   :  { %v3271_v15 = vpop.eup %3270 }
0x1784   :  { %2356 = vrot.lane.b32.xlu0 %v3271_v15, %s3312_s0 }
0x17f6   :  { %v2357_v20 = vpop.permute.xlu0 %2356 }
0x17f7   :  { %v2359_v21 = vmul.f32 %v3269_v5, %v2357_v20 }
0x17f9   :  { %2361 = vrot.lane.b32.xlu1 %v2359_v21, %s3313_s19 }
0x186b   :  { %v2362_v22 = vpop.permute.xlu1 %2361 }
0x186c   :  { %2364 = vst.msk [vmem:[#allocation2 + $0xe] sm:$0x3] %vm508_vm3, %v2362_v22 }
0x1873   :  { %v2366_v23 = vld [vmem:[#allocation2 + $0x8] sm:$0xff] }
0x1874   :  { %3117 = vmatmul.mubr.msk.f32.vlgmr.msra.gmra.mxu1 %vm129_vm2, %v2366_v23 }
0x1875   :  { %3131 = vmatpush3.msra.mxu1 %v2552_v36 }
0x1876   :  { %3132 = vmatprep.subr.mxu1 %v2551_v27 }
0x1877   :  { %3133 = vmatpush3.msra.mxu1 %v2551_v27 }
0x1934   :  { %v3118_v33 = vpop.f32.mrf.mxu1 }
0x1935   :  { %v2454_v35 = vadd.f32 %v3118_v33, %v2688_v32 }
0x1936   :  { %v2448_v13 = vpop.f32.mrf.mxu1 }
0x1937   :  { %v2449_v39 = vadd.f32 %v2688_v32, %v2448_v13  ;;  %v2458_v0 = vmax.f32 %v2454_v35, 0.0 }
0x1939   :  { %v2457_v34 = vmax.f32 %v2449_v39, 0.0 }
0x193b   :  { %3127 = vmatprep.mubr.msk.f32.mxu0 %vm129_vm2, %v2457_v34 }
0x193c   :  { %3128 = vmatmul.mubr.msk.f32.vlgmr.msra.gmra.mxu0 %vm129_vm2, %v2458_v0 }
0x19fc   :  { %v3129_v11 = vpop.f32.mrf.mxu0 }
0x19fd   :  { %v2546_v38 = vadd.f32 %v3129_v11, %v2691_v37 }
0x19fe   :  { %v2540_v40 = vpop.f32.mrf.mxu0 }
0x19ff   :  { %v2541_v28 = vadd.f32 %v2691_v37, %v2540_v40  ;;  %v2550_v42 = vmax.f32 %v2546_v38, 0.0 }
0x1a01   :  { %v2549_v41 = vmax.f32 %v2541_v28, 0.0 }
0x1a03   :  { %3134 = vmatprep.mubr.msk.f32.mxu1 %vm47_vm1, %v2549_v41 }
0x1a04   :  { %3135 = vmatmul.mubr.msk.f32.vlgmr.msra.gmra.mxu1 %vm47_vm1, %v2550_v42 }
0x1ac4   :  { %v3136_v44 = vpop.f32.mrf.mxu1 }
0x1ac5   :  { %v2636_v46 = vadd.f32 %v3136_v44, %v2694_v43 }
0x1ac6   :  { %v2630_v29 = vpop.f32.mrf.mxu1 }
0x1ac7   :  { %2640 = vst [vmem:[%s3770_s2 + $0x8] sm:$0xff] %v2636_v46  ;;  %v2631_v30 = vadd.f32 %v2694_v43, %v2630_v29 }
0x1ac9   :  { %2639 = vst [vmem:[%s3770_s2] sm:$0xff] %v2631_v30 }
0x1aca   :  { %2645 = vsyncpa [#allocation4], 1 }

</bundles_post_ra>
